<compile_context>
chip_gen: v7x
topology: tpu7x:2x2x1
jax: 0.10.0
libtpu: 0.0.40
codegen_flags: <defaults>
</compile_context>

<pallas_src>
import functools

import jax
import jax.numpy as jnp
import numpy as np
from jax.experimental import pallas as pl
from jax.experimental.pallas import tpu as pltpu

OUT_CH = 100          # real out_channels of each conv branch
C_PAD = 128           # lane-padded out_channels per branch
NB = 3                # number of conv branches (kernel sizes 3, 4, 5)
N_FUSED = NB * C_PAD  # 384
KH = 5                # max kernel size; shorter branches zero-padded to 5 taps
L_SEQ = 40            # sequence length implied by MaxPool1d(38/37/36)
L_PAD = 48            # per-example row padding (multiple of 8, >= L_SEQ + KH - 1)


def sentence_cnn_kernel(x_ref, w_ref, b_ref, mask_ref, wf_ref, bf_ref, out_ref,
                        *, act_dtype):
    """One batch tile (TB examples), fully resident in VMEM.

    x_ref   : (TB*48, KH*D) bf16 -- im2col'd batch tile (taps folded into contraction)
    w_ref   : (KH*D, 384)   bf16 -- fused conv weights (branches along N, taps along K)
    b_ref   : (1, 384)      f32  -- fused conv biases
    mask_ref: (48, 384)     f32  -- {0,1} valid-position mask, broadcast over TB
    wf_ref  : (1, 384)      f32  -- de-interleaved fc weights, padded/fused like the convs
    bf_ref  : (1, 1)        f32  -- fc bias
    out_ref : (TB, 128)     f32  -- per-example logit broadcast across lanes
    """
    tb = out_ref.shape[0]

    # Fused VALID conv for all 3 branches: a single bf16 MXU matmul, f32 accumulation.
    acc = jnp.dot(x_ref[...], w_ref[...], preferred_element_type=jnp.float32)
    y = jnp.maximum(acc + b_ref[...], 0.0).astype(act_dtype)      # bias + ReLU

    # (tb*48, 384) -> (tb, 48, 384): 48 is a multiple of 8 so the reshape is layout-free.
    y = y.reshape(tb, L_PAD, N_FUSED)

    # Zero out invalid conv positions (short-branch tails, per-example zero-pad rows).
    # Exact because ReLU output >= 0, so the per-example max is unchanged.
    y = y * mask_ref[...].astype(act_dtype)

    pooled = jnp.max(y, axis=1)                                   # MaxPool1d -> (tb, 384)

    # Fused Linear(300, 1): padded channels carry zero fc weight; accumulate in f32.
    res = jnp.sum(pooled.astype(jnp.float32) * wf_ref[...], axis=-1, keepdims=True)
    res = res + bf_ref[...]                                       # (tb, 1)

    # TODO(synk): Dropout(p=0.5) is eval-mode identity here; training-mode stochastic
    #             masking (pltpu.prng_*) is intentionally not applied.
    out_ref[...] = jnp.broadcast_to(res, (tb, out_ref.shape[1]))  # lane-dense store


def _choose_tile(batch, tb, kd, act_bytes):
    """Pick the batch-tile size: as big as the VMEM budget allows, >=2 grid steps when possible."""
    b8 = -(-batch // 8) * 8
    # Rough per-example VMEM: double-buffered x tile + f32 conv accumulator + activation.
    per_ex = 2 * L_PAD * kd * 2 + L_PAD * N_FUSED * (4 + act_bytes)
    budget = 40 * 1024 * 1024
    tb = min(tb, max(8, (budget // per_ex) // 8 * 8))
    if b8 <= tb:
        # Whole batch fits one tile; when big enough, split in two so v7x's second
        # TensorCore (parallel batch axis) gets work instead of sitting idle.
        return b8 if b8 < 32 else -(-(b8 // 2) // 8) * 8
    return tb


@functools.partial(jax.jit, static_argnames=("tb", "bf16_activations"))
def sentence_cnn_forward(x, params, *, tb=128, bf16_activations=False):
    """x: (B, L, D) float32; L must be 40 (implied by the MaxPool kernel sizes).

    bf16_activations=True is recommended on v6e/v7x (native bf16 VPU, half the
    activation VMEM for the mask/pool passes); keep the f32 default on v5e.
    """
    B, L, D = x.shape
    assert L == L_SEQ, "SentenceCNN's pooling sizes imply a sequence length of 40"
    act_dtype = jnp.bfloat16 if bf16_activations else jnp.float32
    kd = KH * D

    tb_eff = _choose_tile(B, tb, kd, 2 if bf16_activations else 4)
    b_pad = ((B + tb_eff - 1) // tb_eff) * tb_eff

    # im2col in the wrapper: zero-pad each example to 48 (+4 halo) rows, then fold the
    # 5 taps into the feature dim -> a single MXU matmul per tile inside the kernel.
    xp = jnp.zeros((b_pad, L_PAD + KH - 1, D), jnp.bfloat16)
    xp = xp.at[:B, :L, :].set(x.astype(jnp.bfloat16))
    cols = jnp.concatenate([xp[:, k:k + L_PAD, :] for k in range(KH)], axis=-1)
    x_flat = cols.reshape(b_pad * L_PAD, kd)                      # (b_pad*48, 5*D)

    # PyTorch conv weight (O, D, K) -> tap-major (KH, D, 128), zero-padded taps/channels.
    def prep_w(w, k):
        wt = jnp.transpose(w, (2, 1, 0)).astype(jnp.float32)      # (k, D, 100)
        return jnp.zeros((KH, D, C_PAD), jnp.float32).at[:k, :, :OUT_CH].set(wt)

    w_fused = jnp.concatenate([prep_w(params["conv3_w"], 3),
                               prep_w(params["conv4_w"], 4),
                               prep_w(params["conv5_w"], 5)],
                              axis=-1)                            # (5, D, 384)
    w_im2col = w_fused.reshape(kd, N_FUSED).astype(jnp.bfloat16)  # matches im2col order

    def pad_ch(v):
        return jnp.zeros((C_PAD,), jnp.float32).at[:OUT_CH].set(v.astype(jnp.float32))

    b_fused = jnp.concatenate([pad_ch(params["conv3_b"]),
                               pad_ch(params["conv4_b"]),
                               pad_ch(params["conv5_b"])]).reshape(1, N_FUSED)

    # PyTorch flatten order: feature index = channel*3 + branch -> de-interleave fc weights.
    wf = params["fc_w"][0]                                        # (300,)
    wf_fused = jnp.concatenate([pad_ch(wf[0::3]), pad_ch(wf[1::3]),
                                pad_ch(wf[2::3])]).reshape(1, N_FUSED)
    bf = params["fc_b"].reshape(1, 1).astype(jnp.float32)

    # {0,1} valid-position mask, (48, 384): branch with kernel size k is valid for
    # positions 0 .. 40-k; every other position (incl. zero-pad rows) is garbage.
    pos = jnp.arange(L_PAD)[:, None]
    ch = jnp.arange(N_FUSED)[None, :]
    limit = jnp.where(ch < C_PAD, L_SEQ - 3,
                      jnp.where(ch < 2 * C_PAD, L_SEQ - 4, L_SEQ - 5))
    mask = (pos <= limit).astype(jnp.float32)                     # (48, 384)

    kernel = functools.partial(sentence_cnn_kernel, act_dtype=act_dtype)
    out = pl.pallas_call(
        kernel,
        out_shape=jax.ShapeDtypeStruct((b_pad, 128), jnp.float32),
        grid_spec=pltpu.PrefetchScalarGridSpec(
            num_scalar_prefetch=0,
            grid=(b_pad // tb_eff,),
            in_specs=[
                pl.BlockSpec((tb_eff * L_PAD, kd), lambda i: (i, 0)),  # batch tile of x
                # Constant-index blocks below are small (<= kd*384*2 B) and resident;
                # pipeline_mode=pl.Buffered(1) only pays off when D is very large.
                pl.BlockSpec((kd, N_FUSED), lambda i: (0, 0)),
                pl.BlockSpec((1, N_FUSED), lambda i: (0, 0)),
                pl.BlockSpec((L_PAD, N_FUSED), lambda i: (0, 0)),
                pl.BlockSpec((1, N_FUSED), lambda i: (0, 0)),
                pl.BlockSpec((1, 1), lambda i: (0, 0)),
            ],
            out_specs=pl.BlockSpec((tb_eff, 128), lambda i: (i, 0)),
        ),
        compiler_params=pltpu.CompilerParams(
            dimension_semantics=("parallel",),        # megacore-split the batch axis
            vmem_limit_bytes=48 * 1024 * 1024,        # fits v7x's 64 MiB/TC with headroom
        ),
    )(x_flat, w_im2col, b_fused, mask, wf_fused, bf)

    # Padded batch rows carry bias-driven logits; slice them (and the lane broadcast) off.
    return out[:B, 0:1]


def ref_forward(x, p):
    """Pure-JAX reference mirroring the PyTorch forward (eval mode)."""
    xt = jnp.transpose(x, (0, 2, 1))  # (B, D, L), like PyTorch's x.transpose(1, 2)

    def conv_branch(w, b, pool_k):
        y = jax.lax.conv_general_dilated(
            xt, w, window_strides=(1,), padding="VALID",
            dimension_numbers=("NCW", "OIW", "NCW"))
        y = jax.nn.relu(y + b[None, :, None])
        return jnp.max(y[:, :, :pool_k], axis=2, keepdims=True)  # MaxPool1d(pool_k)

    x3 = conv_branch(p["conv3_w"], p["conv3_b"], 38)
    x4 = conv_branch(p["conv4_w"], p["conv4_b"], 37)
    x5 = conv_branch(p["conv5_w"], p["conv5_b"], 36)
    out = jnp.concatenate([x3, x4, x5], axis=2)   # (B, 100, 3)
    out = out.reshape(out.shape[0], -1)           # (B, 300)
    return out @ p["fc_w"].T + p["fc_b"]          # dropout = identity (eval)


def init_params(key, D):
    ks = jax.random.split(key, 8)
    s = 0.1
    return {
        "conv3_w": s * jax.random.normal(ks[0], (OUT_CH, D, 3), jnp.float32),
        "conv3_b": s * jax.random.normal(ks[1], (OUT_CH,), jnp.float32),
        "conv4_w": s * jax.random.normal(ks[2], (OUT_CH, D, 4), jnp.float32),
        "conv4_b": s * jax.random.normal(ks[3], (OUT_CH,), jnp.float32),
        "conv5_w": s * jax.random.normal(ks[4], (OUT_CH, D, 5), jnp.float32),
        "conv5_b": s * jax.random.normal(ks[5], (OUT_CH,), jnp.float32),
        "fc_w": s * jax.random.normal(ks[6], (1, 300), jnp.float32),
        "fc_b": s * jax.random.normal(ks[7], (1,), jnp.float32),
    }


if __name__ == "__main__":
    key = jax.random.PRNGKey(0)
    kx, kp, kx2 = jax.random.split(key, 3)

    L, D = 40, 32          # L=40 is implied by MaxPool1d kernel sizes 38/37/36
    params = init_params(kp, D)

    # Small sanity case (single grid step).  Tolerance reflects the bf16 MXU contract.
    x = jax.random.normal(kx, (2, L, D), jnp.float32)
    out = jax.block_until_ready(sentence_cnn_forward(x, params))
    ref = jax.block_until_ready(ref_forward(x, params))
    np.testing.assert_allclose(np.asarray(out), np.asarray(ref), rtol=2e-2, atol=2e-2)

    # Larger batch: exercises the multi-step grid, megacore split and batch padding.
    x2 = jax.random.normal(kx2, (40, L, D), jnp.float32)
    out2 = jax.block_until_ready(sentence_cnn_forward(x2, params))
    ref2 = jax.block_until_ready(ref_forward(x2, params))
    np.testing.assert_allclose(np.asarray(out2), np.asarray(ref2), rtol=2e-2, atol=2e-2)

    print("KERNEL_OK")
</pallas_src>

<mosaic_0001>
module attributes {stable_mosaic.version = 11 : i64} {
  func.func @sentence_cnn_kernel(%arg0: i32, %arg1: memref<384x160xbf16, #tpu.memory_space<vmem>>, %arg2: memref<160x384xbf16, #tpu.memory_space<vmem>>, %arg3: memref<1x384xf32, #tpu.memory_space<vmem>>, %arg4: memref<48x384xf32, #tpu.memory_space<vmem>>, %arg5: memref<1x384xf32, #tpu.memory_space<vmem>>, %arg6: memref<1x1xf32, #tpu.memory_space<vmem>>, %arg7: memref<8x128xf32, #tpu.memory_space<vmem>>) attributes {dimension_semantics = [#tpu.dimension_semantics<parallel>], iteration_bounds = array<i64: 1>, scalar_prefetch = 0 : i64, scratch_operands = 0 : i64, tpu.core_type = #tpu.core_type<tc>, window_params = [{transform_indices = @transform_0, window_bounds = array<i64: 384, 160>}, {pipeline_mode = #tpu.pipeline_mode<synchronous>, transform_indices = @transform_1, window_bounds = array<i64: 160, 384>}, {pipeline_mode = #tpu.pipeline_mode<synchronous>, transform_indices = @transform_2, window_bounds = array<i64: 1, 384>}, {pipeline_mode = #tpu.pipeline_mode<synchronous>, transform_indices = @transform_3, window_bounds = array<i64: 48, 384>}, {pipeline_mode = #tpu.pipeline_mode<synchronous>, transform_indices = @transform_4, window_bounds = array<i64: 1, 384>}, {pipeline_mode = #tpu.pipeline_mode<synchronous>, transform_indices = @transform_5, window_bounds = array<i64: 1, 1>}, {transform_indices = @transform_6, window_bounds = array<i64: 8, 128>}]} {
    %c0 = arith.constant 0 : index
    %c0_0 = arith.constant 0 : index
    %0 = vector.load %arg1[%c0, %c0_0] : memref<384x160xbf16, #tpu.memory_space<vmem>>, vector<384x160xbf16>
    %c0_1 = arith.constant 0 : index
    %c0_2 = arith.constant 0 : index
    %1 = vector.load %arg2[%c0_1, %c0_2] : memref<160x384xbf16, #tpu.memory_space<vmem>>, vector<160x384xbf16>
    %cst = arith.constant dense<0.000000e+00> : vector<384x384xf32>
    %2 = tpu.matmul %0, %1, %cst {dimension_numbers = #tpu.dot_dimension_numbers<[1], [0], [0], [1], [0, 0, 1, 1], [], []>} : vector<384x160xbf16>, vector<160x384xbf16>, vector<384x384xf32> -> vector<384x384xf32>
    %c0_3 = arith.constant 0 : index
    %c0_4 = arith.constant 0 : index
    %3 = vector.load %arg3[%c0_3, %c0_4] : memref<1x384xf32, #tpu.memory_space<vmem>>, vector<1x384xf32>
    %4 = vector.broadcast %3 : vector<1x384xf32> to vector<384x384xf32>
    %5 = arith.addf %2, %4 : vector<384x384xf32>
    %cst_5 = arith.constant 0.000000e+00 : f32
    %6 = vector.broadcast %cst_5 : f32 to vector<384x384xf32>
    %7 = arith.maximumf %5, %6 : vector<384x384xf32>
    %8 = vector.shape_cast %7 : vector<384x384xf32> to vector<8x48x384xf32>
    %c0_6 = arith.constant 0 : index
    %c0_7 = arith.constant 0 : index
    %9 = vector.load %arg4[%c0_6, %c0_7] : memref<48x384xf32, #tpu.memory_space<vmem>>, vector<48x384xf32>
    %10 = vector.shape_cast %9 : vector<48x384xf32> to vector<1x48x384xf32>
    %11 = vector.broadcast %10 : vector<1x48x384xf32> to vector<8x48x384xf32>
    %12 = arith.mulf %8, %11 : vector<8x48x384xf32>
    %cst_8 = arith.constant dense<0xFF800000> : vector<8x384xf32>
    %13 = vector.multi_reduction <maximumf>, %12, %cst_8 [1] : vector<8x48x384xf32> to vector<8x384xf32>
    %c0_9 = arith.constant 0 : index
    %c0_10 = arith.constant 0 : index
    %14 = vector.load %arg5[%c0_9, %c0_10] : memref<1x384xf32, #tpu.memory_space<vmem>>, vector<1x384xf32>
    %15 = vector.broadcast %14 : vector<1x384xf32> to vector<8x384xf32>
    %16 = arith.mulf %13, %15 : vector<8x384xf32>
    %cst_11 = arith.constant dense<0.000000e+00> : vector<8xf32>
    %17 = vector.multi_reduction <add>, %16, %cst_11 [1] : vector<8x384xf32> to vector<8xf32>
    %18 = vector.shape_cast %17 : vector<8xf32> to vector<8x1xf32>
    %c0_12 = arith.constant 0 : index
    %c0_13 = arith.constant 0 : index
    %19 = vector.load %arg6[%c0_12, %c0_13] : memref<1x1xf32, #tpu.memory_space<vmem>>, vector<1x1xf32>
    %20 = vector.broadcast %19 : vector<1x1xf32> to vector<8x1xf32>
    %21 = arith.addf %18, %20 : vector<8x1xf32>
    %22 = vector.shape_cast %21 : vector<8x1xf32> to vector<8x1xf32>
    %23 = vector.broadcast %22 : vector<8x1xf32> to vector<8x128xf32>
    %c0_14 = arith.constant 0 : index
    %c0_15 = arith.constant 0 : index
    %24 = vector.load %arg7[%c0_14, %c0_15] : memref<8x128xf32, #tpu.memory_space<vmem>>, vector<8x128xf32>
    tpu.vector_store %arg7[%c0_14, %c0_15], %23 {strides = array<i32>} : memref<8x128xf32, #tpu.memory_space<vmem>>, vector<8x128xf32>,
    return
  }
  func.func @transform_0(%arg0: i32) -> (i32, i32) {
    %c0_i32 = arith.constant 0 : i32
    %c0_i32_0 = arith.constant 0 : i32
    return %arg0, %c0_i32 : i32, i32
  }
  func.func @transform_1(%arg0: i32) -> (i32, i32) {
    %c0_i32 = arith.constant 0 : i32
    %c0_i32_0 = arith.constant 0 : i32
    %c0_i32_1 = arith.constant 0 : i32
    return %c0_i32, %c0_i32_0 : i32, i32
  }
  func.func @transform_2(%arg0: i32) -> (i32, i32) {
    %c0_i32 = arith.constant 0 : i32
    %c0_i32_0 = arith.constant 0 : i32
    %c0_i32_1 = arith.constant 0 : i32
    return %c0_i32, %c0_i32_0 : i32, i32
  }
  func.func @transform_3(%arg0: i32) -> (i32, i32) {
    %c0_i32 = arith.constant 0 : i32
    %c0_i32_0 = arith.constant 0 : i32
    %c0_i32_1 = arith.constant 0 : i32
    return %c0_i32, %c0_i32_0 : i32, i32
  }
  func.func @transform_4(%arg0: i32) -> (i32, i32) {
    %c0_i32 = arith.constant 0 : i32
    %c0_i32_0 = arith.constant 0 : i32
    %c0_i32_1 = arith.constant 0 : i32
    return %c0_i32, %c0_i32_0 : i32, i32
  }
  func.func @transform_5(%arg0: i32) -> (i32, i32) {
    %c0_i32 = arith.constant 0 : i32
    %c0_i32_0 = arith.constant 0 : i32
    %c0_i32_1 = arith.constant 0 : i32
    return %c0_i32, %c0_i32_0 : i32, i32
  }
  func.func @transform_6(%arg0: i32) -> (i32, i32) {
    %c0_i32 = arith.constant 0 : i32
    %c0_i32_0 = arith.constant 0 : i32
    return %arg0, %c0_i32 : i32, i32
  }
}

</mosaic_0001>

<bundles_post_ra>
// kernel: sentence_cnn_forward.1
= control target key start
LH: loop header
LB: loop body
LE: loop exit
PB: predicated region body
PF: predicated region fallthrough
CT: control target
= control target key end

     0   :  { %v2046_v0 = vmov 0   ;;  %vm507_vm0 = vcmask 261120   ;;  %vm1714_vm1 = vcmask 1041409   ;;  %vm1717_vm2 = vcmask 1042434   ;;  %s3000_s1 = inlined_call_operand.vmem [shape: bf16[160,384], index: 1, kind: input, shape index: {}]   ;;  %s3001_s0 = inlined_call_operand.vmem [shape: bf16[384,160], index: 0, kind: input, shape index: {}]   ;;  %s3002_s2 = inlined_call_operand.vmem [shape: f32[1,384], index: 2, kind: input, shape index: {}]   ;;  %s3003_s3 = inlined_call_operand.vmem [shape: f32[48,384], index: 3, kind: input, shape index: {}]   ;;  %s3004_s4 = inlined_call_operand.vmem [shape: f32[1,384], index: 4, kind: input, shape index: {}]   ;;  %s3005_s5 = inlined_call_operand.<no memory space> [shape: f32[1,1], index: 5, kind: input, shape index: {}]   ;;  %s3006_s6 = inlined_call_operand.vmem [shape: f32[8,128], index: 6, kind: output, shape index: {}]  }
   0x1   :  { %853 = vmatprep.subr.bf16.mxu1 %v2046_v0  ;;  %v1916_v1 = vld [vmem:[%s3000_s1 + $0x4] ss:$12 sps:$4 sm:$0xff]   ;;  %1915 = vset.pattern.permute.xlu0 %v2046_v0  ;;  %v1918_v2 = vld [vmem:[%s3000_s1 + $0x8] ss:$12 sps:$4 sm:$0xff]   ;;  %v1919_v3 = vld [vmem:[%s3000_s1] ss:$12 sps:$4 sm:$0xff]  }
   0x2   :  { %580 = vmatprep.subr.bf16.mxu0 %v1916_v1  ;;  %854 = vmatpush1.bf16.msra.mxu1 %v1918_v2  ;;  %v1920_v4 = vld [vmem:[%s3000_s1 + $0x1c] ss:$12 sps:$4 sm:$0xff]   ;;  %v1922_v5 = vld [vmem:[%s3000_s1 + $0x20] ss:$12 sps:$4 sm:$0xff]   ;;  %v1923_v6 = vld [vmem:[%s3000_s1 + $0x18] ss:$12 sps:$4 sm:$0xff]  }
   0x3   :  { %581 = vmatpush1.bf16.msra.mxu0 %v1919_v3  ;;  %855 = vmatprep.subr.bf16.mxu1 %v2046_v0  ;;  %v1924_v7 = vld [vmem:[%s3000_s1 + $0x34] ss:$12 sps:$4 sm:$0xff]   ;;  %v1926_v8 = vld [vmem:[%s3000_s1 + $0x38] ss:$12 sps:$4 sm:$0xff]   ;;  %v1927_v9 = vld [vmem:[%s3000_s1 + $0x30] ss:$12 sps:$4 sm:$0xff]  }
   0x4   :  { %582 = vmatprep.subr.bf16.mxu0 %v1920_v4  ;;  %v1928_v10 = vld [vmem:[%s3000_s1 + $0x4c] ss:$12 sps:$4 sm:$0xff]   ;;  %v1930_v11 = vld [vmem:[%s3000_s1 + $0x50] ss:$12 sps:$4 sm:$0xff]   ;;  %v1931_v12 = vld [vmem:[%s3000_s1 + $0x48] ss:$12 sps:$4 sm:$0xff]  }
   0x5   :  { %v1932_v13 = vld [vmem:[%s3000_s1 + $0x64] ss:$12 sps:$4 sm:$0xff]   ;;  %v1934_v14 = vld [vmem:[%s3000_s1 + $0x68] ss:$12 sps:$4 sm:$0xff]   ;;  %v1935_v15 = vld [vmem:[%s3000_s1 + $0x60] ss:$12 sps:$4 sm:$0xff]  }
   0x6   :  { %856 = vmatpush1.bf16.msra.mxu1 %v1922_v5  ;;  %v1936_v16 = vld [vmem:[%s3000_s1 + $0x7c] ss:$12 sps:$4 sm:$0xff]   ;;  %v1938_v17 = vld [vmem:[%s3000_s1 + $0x80] ss:$12 sps:$4 sm:$0xff]   ;;  %v1939_v18 = vld [vmem:[%s3000_s1 + $0x78] ss:$12 sps:$4 sm:$0xff]  }
   0x7   :  { %583 = vmatpush1.bf16.msra.mxu0 %v1923_v6  ;;  %857 = vmatprep.subr.bf16.mxu1 %v2046_v0  ;;  %v1940_v19 = vld [vmem:[%s3000_s1 + $0x94] ss:$12 sps:$4 sm:$0xff]   ;;  %v1942_v20 = vld [vmem:[%s3000_s1 + $0x98] ss:$12 sps:$4 sm:$0xff]   ;;  %v1943_v21 = vld [vmem:[%s3000_s1 + $0x90] ss:$12 sps:$4 sm:$0xff]  }
   0x8   :  { %584 = vmatprep.subr.bf16.mxu0 %v1924_v7  ;;  %v1958_v22 = vld [vmem:[%s3001_s0 + $0x4] ss:$8 sps:$4 sm:$0xff]   ;;  %v1946_v24 = vld [vmem:[%s3000_s1 + $0xb0] ss:$12 sps:$4 sm:$0xff]   ;;  %v1947_v25 = vld [vmem:[%s3000_s1 + $0xa8] ss:$12 sps:$4 sm:$0xff]  }
   0x9   :  { %v1944_v23 = vld [vmem:[%s3000_s1 + $0xac] ss:$12 sps:$4 sm:$0xff]   ;;  %1889 = vmatprep.mubr.msk.bf16.mxu1 %vm507_vm0, %v1958_v22  ;;  %1865 = vmatprep.mubr.msk.bf16.mxu0 %vm507_vm0, %v1958_v22  ;;  %v1948_v26 = vld [vmem:[%s3000_s1 + $0xc4] ss:$12 sps:$4 sm:$0xff]   ;;  %v1950_v27 = vld [vmem:[%s3000_s1 + $0xc8] ss:$12 sps:$4 sm:$0xff]  }
   0xa   :  { %858 = vmatpush1.bf16.msra.mxu1 %v1926_v8  ;;  %v1951_v28 = vld [vmem:[%s3000_s1 + $0xc0] ss:$12 sps:$4 sm:$0xff]   ;;  %v1952_v29 = vld [vmem:[%s3000_s1 + $0xdc] ss:$12 sps:$4 sm:$0xff]   ;;  %v1955_v31 = vld [vmem:[%s3000_s1 + $0xd8] ss:$12 sps:$4 sm:$0xff]  }
   0xb   :  { %585 = vmatpush1.bf16.msra.mxu0 %v1927_v9  ;;  %859 = vmatprep.subr.bf16.mxu1 %v2046_v0  ;;  %v1954_v30 = vld [vmem:[%s3000_s1 + $0xe0] ss:$12 sps:$4 sm:$0xff]   ;;  %v1959_v33 = vld [vmem:[%s3001_s0 + $0x14] ss:$8 sps:$4 sm:$0xff]   ;;  %v1961_v34 = vld [vmem:[%s3001_s0 + $0x10] ss:$8 sps:$4 sm:$0xff]  }
   0xc   :  { %586 = vmatprep.subr.bf16.mxu0 %v1928_v10  ;;  %v1956_v32 = vld [vmem:[%s3001_s0] ss:$8 sps:$4 sm:$0xff]   ;;  %v1962_v35 = vld [vmem:[%s3001_s0 + $0x24] ss:$8 sps:$4 sm:$0xff]   ;;  %v1965_v37 = vld [vmem:[%s3001_s0 + $0x34] ss:$8 sps:$4 sm:$0xff]  }
   0xd   :  { %v1964_v36 = vld [vmem:[%s3001_s0 + $0x20] ss:$8 sps:$4 sm:$0xff]   ;;  %v1967_v38 = vld [vmem:[%s3001_s0 + $0x30] ss:$8 sps:$4 sm:$0xff]   ;;  %v1968_v39 = vld [vmem:[%s3001_s0 + $0x44] ss:$8 sps:$4 sm:$0xff]  }
   0xe   :  { %860 = vmatpush1.bf16.msra.mxu1 %v1930_v11  ;;  %v1970_v40 = vld [vmem:[%s3001_s0 + $0x40] ss:$8 sps:$4 sm:$0xff]   ;;  %v1971_v41 = vld [vmem:[%s3001_s0 + $0x54] ss:$8 sps:$4 sm:$0xff]   ;;  %v1973_v42 = vld [vmem:[%s3001_s0 + $0x50] ss:$8 sps:$4 sm:$0xff]  }
   0xf   :  { %587 = vmatpush1.bf16.msra.mxu0 %v1931_v12  ;;  %861 = vmatprep.subr.bf16.mxu1 %v2046_v0  ;;  %v1974_v43 = vld [vmem:[%s3001_s0 + $0x64] ss:$8 sps:$4 sm:$0xff]   ;;  %v1976_v44 = vld [vmem:[%s3001_s0 + $0x60] ss:$8 sps:$4 sm:$0xff]   ;;  %v1977_v45 = vld [vmem:[%s3001_s0 + $0x74] ss:$8 sps:$4 sm:$0xff]  }
  0x10   :  { %588 = vmatprep.subr.bf16.mxu0 %v1932_v13  ;;  %v1979_v46 = vld [vmem:[%s3001_s0 + $0x70] ss:$8 sps:$4 sm:$0xff]   ;;  %v1980_v47 = vld [vmem:[%s3001_s0 + $0x84] ss:$8 sps:$4 sm:$0xff]   ;;  %v1982_v48 = vld [vmem:[%s3001_s0 + $0x80] ss:$8 sps:$4 sm:$0xff]  }
  0x11   :  { %v1983_v49 = vld [vmem:[%s3001_s0 + $0x94] ss:$8 sps:$4 sm:$0xff]   ;;  %v1985_v50 = vld [vmem:[%s3001_s0 + $0x90] ss:$8 sps:$4 sm:$0xff]   ;;  %v1986_v51 = vld [vmem:[%s3001_s0 + $0xa4] ss:$8 sps:$4 sm:$0xff]  }
  0x12   :  { %862 = vmatpush1.bf16.msra.mxu1 %v1934_v14  ;;  %v1988_v52 = vld [vmem:[%s3001_s0 + $0xa0] ss:$8 sps:$4 sm:$0xff]   ;;  %v1989_v53 = vld [vmem:[%s3001_s0 + $0xb4] ss:$8 sps:$4 sm:$0xff]   ;;  %v1991_v54 = vld [vmem:[%s3001_s0 + $0xb0] ss:$8 sps:$4 sm:$0xff]  }
  0x13   :  { %589 = vmatpush1.bf16.msra.mxu0 %v1935_v15  ;;  %863 = vmatprep.subr.bf16.mxu1 %v2046_v0  ;;  %v1992_v55 = vld [vmem:[%s3001_s0 + $0xc4] ss:$8 sps:$4 sm:$0xff]   ;;  %v1994_v56 = vld [vmem:[%s3001_s0 + $0xc0] ss:$8 sps:$4 sm:$0xff]   ;;  %v1995_v57 = vld [vmem:[%s3001_s0 + $0xd4] ss:$8 sps:$4 sm:$0xff]   ;;  %v116_v15 = vlaneseq }
  0x14   :  { %590 = vmatprep.subr.bf16.mxu0 %v1936_v16  ;;  %v1997_v58 = vld [vmem:[%s3001_s0 + $0xd0] ss:$8 sps:$4 sm:$0xff]   ;;  %v1998_v59 = vld [vmem:[%s3001_s0 + $0xe4] ss:$8 sps:$4 sm:$0xff]   ;;  %v2000_v60 = vld [vmem:[%s3001_s0 + $0xe0] ss:$8 sps:$4 sm:$0xff]  }
  0x15   :  { %v2001_v61 = vld [vmem:[%s3001_s0 + $0xf4] ss:$8 sps:$4 sm:$0xff]   ;;  %v2003_v62 = vld [vmem:[%s3001_s0 + $0xf0] ss:$8 sps:$4 sm:$0xff]   ;;  %v2004_v63 = vld [vmem:[%s3001_s0 + $0x104] ss:$8 sps:$4 sm:$0xff]  }
  0x16   :  { %864 = vmatpush1.bf16.msra.mxu1 %v1938_v17  ;;  %v2007_v1 = vld [vmem:[%s3001_s0 + $0x114] ss:$8 sps:$4 sm:$0xff]   ;;  %v2009_v2 = vld [vmem:[%s3001_s0 + $0x110] ss:$8 sps:$4 sm:$0xff]   ;;  %v2010_v3 = vld [vmem:[%s3001_s0 + $0x124] ss:$8 sps:$4 sm:$0xff]  }
  0x17   :  { %591 = vmatpush1.bf16.msra.mxu0 %v1939_v18  ;;  %865 = vmatprep.subr.bf16.mxu1 %v2046_v0  ;;  %v2012_v4 = vld [vmem:[%s3001_s0 + $0x120] ss:$8 sps:$4 sm:$0xff]   ;;  %v2013_v5 = vld [vmem:[%s3001_s0 + $0x134] ss:$8 sps:$4 sm:$0xff]   ;;  %v2015_v6 = vld [vmem:[%s3001_s0 + $0x130] ss:$8 sps:$4 sm:$0xff]  }
  0x18   :  { %592 = vmatprep.subr.bf16.mxu0 %v1940_v19  ;;  %v2016_v7 = vld [vmem:[%s3001_s0 + $0x144] ss:$8 sps:$4 sm:$0xff]   ;;  %v2018_v8 = vld [vmem:[%s3001_s0 + $0x140] ss:$8 sps:$4 sm:$0xff]   ;;  %v2019_v9 = vld [vmem:[%s3001_s0 + $0x154] ss:$8 sps:$4 sm:$0xff]  }
  0x19   :  { %v2021_v10 = vld [vmem:[%s3001_s0 + $0x150] ss:$8 sps:$4 sm:$0xff]   ;;  %v2022_v11 = vld [vmem:[%s3001_s0 + $0x164] ss:$8 sps:$4 sm:$0xff]   ;;  %v2024_v12 = vld [vmem:[%s3001_s0 + $0x160] ss:$8 sps:$4 sm:$0xff]  }
  0x1a   :  { %866 = vmatpush1.bf16.msra.mxu1 %v1942_v20  ;;  %v2025_v13 = vld [vmem:[%s3001_s0 + $0x174] ss:$8 sps:$4 sm:$0xff]   ;;  %v2027_v14 = vld [vmem:[%s3001_s0 + $0x170] ss:$8 sps:$4 sm:$0xff]   ;;  %v2375_v16 = vshrl.u32 %v116_v15, 7  ;;  %vm1720_vm3 = vcmask 1043459  }
  0x1b   :  { %593 = vmatpush1.bf16.msra.mxu0 %v1943_v21  ;;  %867 = vmatprep.subr.bf16.mxu1 %v2046_v0  ;;  %v114_v19 = vld [vmem:[%s3002_s2] sm:$0x7]  ;;  %vm1723_vm4 = vcmask 1044484   ;;  %vm1726_vm5 = vcmask 1045509   ;;  %vm1729_vm6 = vcmask 1046534   ;;  %vm1732_vm7 = vcmask 1047559  }
  0x1c   :  { %594 = vmatprep.subr.bf16.mxu0 %v1944_v23  ;;  %v126_v17 = vsub.s32 2, %v2375_v16  ;;  %v118_v18 = vsub.s32 0, %v2375_v16  ;;  %v122_v20 = vsub.s32 1, %v2375_v16 }
  0x1e   :  { %868 = vmatpush1.bf16.msra.mxu1 %v1946_v24  ;;  %v2385_v21 = vrot.slane %v114_v19, %v126_v17  ;;  %v2389_v22 = vrot.slane %v114_v19, %v118_v18  ;;  %v2393_v23 = vrot.slane %v114_v19, %v122_v20 }
  0x1f   :  { %595 = vmatpush1.bf16.msra.mxu0 %v1947_v25  ;;  %869 = vmatprep.subr.bf16.mxu1 %v2046_v0 }
  0x20   :  { %596 = vmatprep.subr.bf16.mxu0 %v1948_v26 }
  0x22   :  { %870 = vmatpush1.bf16.msra.mxu1 %v1950_v27 }
  0x23   :  { %597 = vmatpush1.bf16.msra.mxu0 %v1951_v28  ;;  %871 = vmatprep.subr.bf16.mxu1 %v2046_v0  ;;  %v2006_v0 = vld [vmem:[%s3001_s0 + $0x100] ss:$8 sps:$4 sm:$0xff]  }
  0x24   :  { %598 = vmatprep.subr.bf16.mxu0 %v1952_v29  ;;  %v2400_v29 = vld [vmem:[%s3003_s3 + $0x10] sm:$0xff] }
  0x26   :  { %872 = vmatpush1.bf16.msra.mxu1 %v1954_v30 }
  0x27   :  { %599 = vmatpush1.bf16.msra.mxu0 %v1955_v31 }
  0x29   :  { %886 = vmatmul.mubr.bf16.vlgmr.msra.gmra.mrb[0].mxu1 %v1956_v32 }
  0x2a   :  { %613 = vmatmul.mubr.bf16.vlgmr.msra.gmra.mrb[0].mxu0 %v1956_v32  ;;  %1890 = vmatprep.mubr.msk.bf16.mxu1 %vm507_vm0, %v1959_v33 }
  0x2b   :  { %1866 = vmatprep.mubr.msk.bf16.mxu0 %vm507_vm0, %v1959_v33 }
  0x31   :  { %894 = vmatmul.mubr.bf16.gmra.mrb[4].mxu1 %v1961_v34 }
  0x32   :  { %623 = vmatmul.mubr.bf16.gmra.mrb[4].mxu0 %v1961_v34  ;;  %1891 = vmatprep.mubr.msk.bf16.mxu1 %vm507_vm0, %v1962_v35 }
  0x33   :  { %1867 = vmatprep.mubr.msk.bf16.mxu0 %vm507_vm0, %v1962_v35 }
  0x39   :  { %902 = vmatmul.mubr.bf16.gmra.mrb[8].mxu1 %v1964_v36 }
  0x3a   :  { %633 = vmatmul.mubr.bf16.gmra.mrb[8].mxu0 %v1964_v36  ;;  %1892 = vmatprep.mubr.msk.bf16.mxu1 %vm507_vm0, %v1965_v37 }
  0x3b   :  { %1868 = vmatprep.mubr.msk.bf16.mxu0 %vm507_vm0, %v1965_v37 }
  0x41   :  { %910 = vmatmul.mubr.bf16.gmra.mrb[12].mxu1 %v1967_v38 }
  0x42   :  { %643 = vmatmul.mubr.bf16.gmra.mrb[12].mxu0 %v1967_v38  ;;  %1893 = vmatprep.mubr.msk.bf16.mxu1 %vm507_vm0, %v1968_v39 }
  0x43   :  { %1869 = vmatprep.mubr.msk.bf16.mxu0 %vm507_vm0, %v1968_v39  ;;  %v2408_v39 = vld [vmem:[%s3003_s3 + $0x28] sm:$0xff] }
  0x49   :  { %918 = vmatmul.mubr.bf16.gmra.mrb[16].mxu1 %v1970_v40 }
  0x4a   :  { %653 = vmatmul.mubr.bf16.gmra.mrb[16].mxu0 %v1970_v40  ;;  %1894 = vmatprep.mubr.msk.bf16.mxu1 %vm507_vm0, %v1971_v41 }
  0x4b   :  { %1870 = vmatprep.mubr.msk.bf16.mxu0 %vm507_vm0, %v1971_v41  ;;  %v2413_v41 = vld [vmem:[%s3003_s3] sm:$0xff] }
  0x51   :  { %926 = vmatmul.mubr.bf16.gmra.mrb[20].mxu1 %v1973_v42 }
  0x52   :  { %663 = vmatmul.mubr.bf16.gmra.mrb[20].mxu0 %v1973_v42  ;;  %1895 = vmatprep.mubr.msk.bf16.mxu1 %vm507_vm0, %v1974_v43 }
  0x53   :  { %1871 = vmatprep.mubr.msk.bf16.mxu0 %vm507_vm0, %v1974_v43 }
  0x59   :  { %934 = vmatmul.mubr.bf16.gmra.mrb[24].mxu1 %v1976_v44 }
  0x5a   :  { %673 = vmatmul.mubr.bf16.gmra.mrb[24].mxu0 %v1976_v44  ;;  %1896 = vmatprep.mubr.msk.bf16.mxu1 %vm507_vm0, %v1977_v45  ;;  %v2419_v44 = vld [vmem:[%s3003_s3 + $0x18] sm:$0xff] }
  0x5b   :  { %1872 = vmatprep.mubr.msk.bf16.mxu0 %vm507_vm0, %v1977_v45 }
  0x61   :  { %942 = vmatmul.mubr.bf16.gmra.mrb[28].mxu1 %v1979_v46 }
  0x62   :  { %683 = vmatmul.mubr.bf16.gmra.mrb[28].mxu0 %v1979_v46  ;;  %1897 = vmatprep.mubr.msk.bf16.mxu1 %vm507_vm0, %v1980_v47 }
  0x63   :  { %1873 = vmatprep.mubr.msk.bf16.mxu0 %vm507_vm0, %v1980_v47  ;;  %v2425_v47 = vld [vmem:[%s3003_s3 + $0x8] sm:$0xff] }
  0x69   :  { %950 = vmatmul.mubr.bf16.gmra.mrb[32].mxu1 %v1982_v48 }
  0x6a   :  { %693 = vmatmul.mubr.bf16.gmra.mrb[32].mxu0 %v1982_v48  ;;  %1898 = vmatprep.mubr.msk.bf16.mxu1 %vm507_vm0, %v1983_v49 }
  0x6b   :  { %1874 = vmatprep.mubr.msk.bf16.mxu0 %vm507_vm0, %v1983_v49  ;;  %v2430_v49 = vld [vmem:[%s3003_s3 + $0x20] sm:$0xff] }
  0x71   :  { %958 = vmatmul.mubr.bf16.gmra.mrb[36].mxu1 %v1985_v50 }
  0x72   :  { %703 = vmatmul.mubr.bf16.gmra.mrb[36].mxu0 %v1985_v50  ;;  %1899 = vmatprep.mubr.msk.bf16.mxu1 %vm507_vm0, %v1986_v51 }
  0x73   :  { %1875 = vmatprep.mubr.msk.bf16.mxu0 %vm507_vm0, %v1986_v51 }
  0x79   :  { %966 = vmatmul.mubr.bf16.gmra.mrb[40].mxu1 %v1988_v52 }
  0x7a   :  { %713 = vmatmul.mubr.bf16.gmra.mrb[40].mxu0 %v1988_v52  ;;  %1900 = vmatprep.mubr.msk.bf16.mxu1 %vm507_vm0, %v1989_v53 }
  0x7b   :  { %1876 = vmatprep.mubr.msk.bf16.mxu0 %vm507_vm0, %v1989_v53 }
  0x81   :  { %974 = vmatmul.mubr.bf16.gmra.mrb[44].mxu1 %v1991_v54 }
  0x82   :  { %723 = vmatmul.mubr.bf16.gmra.mrb[44].mxu0 %v1991_v54  ;;  %1901 = vmatprep.mubr.msk.bf16.mxu1 %vm507_vm0, %v1992_v55 }
  0x83   :  { %1877 = vmatprep.mubr.msk.bf16.mxu0 %vm507_vm0, %v1992_v55 }
  0x89   :  { %982 = vmatmul.mubr.bf16.gmra.mrb[48].mxu1 %v1994_v56 }
  0x8a   :  { %733 = vmatmul.mubr.bf16.gmra.mrb[48].mxu0 %v1994_v56  ;;  %1902 = vmatprep.mubr.msk.bf16.mxu1 %vm507_vm0, %v1995_v57 }
  0x8b   :  { %1878 = vmatprep.mubr.msk.bf16.mxu0 %vm507_vm0, %v1995_v57 }
  0x91   :  { %990 = vmatmul.mubr.bf16.gmra.mrb[52].mxu1 %v1997_v58 }
  0x92   :  { %743 = vmatmul.mubr.bf16.gmra.mrb[52].mxu0 %v1997_v58  ;;  %1903 = vmatprep.mubr.msk.bf16.mxu1 %vm507_vm0, %v1998_v59 }
  0x93   :  { %1879 = vmatprep.mubr.msk.bf16.mxu0 %vm507_vm0, %v1998_v59 }
  0x99   :  { %998 = vmatmul.mubr.bf16.gmra.mrb[56].mxu1 %v2000_v60 }
  0x9a   :  { %753 = vmatmul.mubr.bf16.gmra.mrb[56].mxu0 %v2000_v60  ;;  %1904 = vmatprep.mubr.msk.bf16.mxu1 %vm507_vm0, %v2001_v61 }
  0x9b   :  { %1880 = vmatprep.mubr.msk.bf16.mxu0 %vm507_vm0, %v2001_v61 }
  0xa1   :  { %1006 = vmatmul.mubr.bf16.gmra.mrb[60].mxu1 %v2003_v62 }
  0xa2   :  { %763 = vmatmul.mubr.bf16.gmra.mrb[60].mxu0 %v2003_v62  ;;  %1905 = vmatprep.mubr.msk.bf16.mxu1 %vm507_vm0, %v2004_v63  ;;  %v2441_v62 = vld [vmem:[%s3003_s3 + $0x40] sm:$0xff] }
  0xa3   :  { %1881 = vmatprep.mubr.msk.bf16.mxu0 %vm507_vm0, %v2004_v63 }
  0xa9   :  { %1014 = vmatmul.mubr.bf16.gmra.mrb[64].mxu1 %v2006_v0 }
  0xaa   :  { %773 = vmatmul.mubr.bf16.gmra.mrb[64].mxu0 %v2006_v0  ;;  %1906 = vmatprep.mubr.msk.bf16.mxu1 %vm507_vm0, %v2007_v1 }
  0xab   :  { %1882 = vmatprep.mubr.msk.bf16.mxu0 %vm507_vm0, %v2007_v1 }
  0xb1   :  { %1022 = vmatmul.mubr.bf16.gmra.mrb[68].mxu1 %v2009_v2 }
  0xb2   :  { %783 = vmatmul.mubr.bf16.gmra.mrb[68].mxu0 %v2009_v2  ;;  %1907 = vmatprep.mubr.msk.bf16.mxu1 %vm507_vm0, %v2010_v3 }
  0xb3   :  { %1883 = vmatprep.mubr.msk.bf16.mxu0 %vm507_vm0, %v2010_v3 }
  0xb9   :  { %1030 = vmatmul.mubr.bf16.gmra.mrb[72].mxu1 %v2012_v4 }
  0xba   :  { %793 = vmatmul.mubr.bf16.gmra.mrb[72].mxu0 %v2012_v4  ;;  %1908 = vmatprep.mubr.msk.bf16.mxu1 %vm507_vm0, %v2013_v5  ;;  %v2447_v4 = vld [vmem:[%s3003_s3 + $0x30] sm:$0xff] }
  0xbb   :  { %1884 = vmatprep.mubr.msk.bf16.mxu0 %vm507_vm0, %v2013_v5 }
  0xc1   :  { %1038 = vmatmul.mubr.bf16.gmra.mrb[76].mxu1 %v2015_v6 }
  0xc2   :  { %803 = vmatmul.mubr.bf16.gmra.mrb[76].mxu0 %v2015_v6  ;;  %1909 = vmatprep.mubr.msk.bf16.mxu1 %vm507_vm0, %v2016_v7 }
  0xc3   :  { %1885 = vmatprep.mubr.msk.bf16.mxu0 %vm507_vm0, %v2016_v7 }
  0xc9   :  { %1046 = vmatmul.mubr.bf16.gmra.mrb[80].mxu1 %v2018_v8 }
  0xca   :  { %813 = vmatmul.mubr.bf16.gmra.mrb[80].mxu0 %v2018_v8  ;;  %1910 = vmatprep.mubr.msk.bf16.mxu1 %vm507_vm0, %v2019_v9 }
  0xcb   :  { %1886 = vmatprep.mubr.msk.bf16.mxu0 %vm507_vm0, %v2019_v9 }
  0xd1   :  { %1054 = vmatmul.mubr.bf16.gmra.mrb[84].mxu1 %v2021_v10 }
  0xd2   :  { %823 = vmatmul.mubr.bf16.gmra.mrb[84].mxu0 %v2021_v10  ;;  %1911 = vmatprep.mubr.msk.bf16.mxu1 %vm507_vm0, %v2022_v11  ;;  %v2454_v10 = vld [vmem:[%s3003_s3 + $0x38] sm:$0xff] }
  0xd3   :  { %1887 = vmatprep.mubr.msk.bf16.mxu0 %vm507_vm0, %v2022_v11  ;;  %v2459_v11 = vld [vmem:[%s3003_s3 + $0x58] sm:$0xff] }
  0xd9   :  { %1062 = vmatmul.mubr.bf16.gmra.mrb[88].mxu1 %v2024_v12 }
  0xda   :  { %833 = vmatmul.mubr.bf16.gmra.mrb[88].mxu0 %v2024_v12  ;;  %1912 = vmatprep.mubr.msk.bf16.mxu1 %vm507_vm0, %v2025_v13 }
  0xdb   :  { %1888 = vmatprep.mubr.msk.bf16.mxu0 %vm507_vm0, %v2025_v13 }
  0xe1   :  { %1070 = vmatmul.mubr.bf16.gmra.mrb[92].mxu1 %v2027_v14 }
  0xe2   :  { %843 = vmatmul.mubr.bf16.gmra.mrb[92].mxu0 %v2027_v14 }
  0xfc   :  { %v887_v24 = vpop.f32.mrb[0].mxu1 }
  0xfd   :  { %v614_v25 = vpop.f32.mrb[0].mxu0  ;;  %v888_v26 = vadd.f32 %v887_v24, %v2385_v21  ;;  %v889_v27 = vpop.f32.mrb[1].mxu1  ;;  %v2466_v24 = vld [vmem:[%s3003_s3 + $0x48] sm:$0xff] }
  0xfe   :  { %v615_v28 = vadd.f32 %v614_v25, %v2389_v22  ;;  %v616_v30 = vpop.f32.mrb[1].mxu0  ;;  %v890_v31 = vpop.f32.mrb[2].mxu1 }
  0xff   :  { %v1080_v32 = vmax.f32 %v888_v26, 0.0  ;;  %v617_v33 = vadd.f32 %v616_v30, %v2393_v23  ;;  %v618_v34 = vpop.f32.mrb[2].mxu0  ;;  %v891_v35 = vadd.f32 %v890_v31, %v2385_v21  ;;  %v892_v36 = vpop.f32.mrb[3].mxu1 }
 0x100   :  { %v1078_v37 = vmax.f32 %v615_v28, 0.0  ;;  %v619_v38 = vadd.f32 %v618_v34, %v2389_v22  ;;  %v620_v40 = vpop.f32.mrb[3].mxu0  ;;  %v2473_v28 = vld [vmem:[%s3003_s3 + $0x50] sm:$0xff] }
 0x101   :  { %v1242_v42 = vmul.f32 %v2400_v29, %v1080_v32  ;;  %v1079_v43 = vmax.f32 %v617_v33, 0.0  ;;  %v1083_v45 = vmax.f32 %v891_v35, 0.0  ;;  %v621_v46 = vadd.f32 %v620_v40, %v2393_v23 }
 0x102   :  { %v1081_v48 = vmax.f32 %v619_v38, 0.0  ;;  %v1240_v52 = vmul.f32 %v2413_v41, %v1078_v37 }
 0x103   :  { %v1245_v50 = vmul.f32 %v2408_v39, %v1083_v45  ;;  %v1082_v51 = vmax.f32 %v621_v46, 0.0  ;;  %v1241_v55 = vmul.f32 %v2425_v47, %v1079_v43 }
 0x104   :  { %v1243_v53 = vmul.f32 %v2419_v44, %v1081_v48  ;;  %v895_v54 = vpop.f32.mrb[4].mxu1  ;;  %v2483_v48 = vld [vmem:[%s3003_s3 + $0x70] sm:$0xff] }
 0x105   :  { %v1406_v56 = vmax.f32 %v1242_v42, %v1245_v50  ;;  %v1244_v57 = vmul.f32 %v2430_v49, %v1082_v51  ;;  %v896_v58 = vadd.f32 %v895_v54, %v2385_v21  ;;  %v624_v59 = vpop.f32.mrb[4].mxu0  ;;  %v897_v60 = vpop.f32.mrb[5].mxu1 }
 0x106   :  { %v1384_v61 = vmax.f32 %v1240_v52, %v1243_v53  ;;  %v625_v63 = vadd.f32 %v624_v59, %v2389_v22  ;;  %v626_v0 = vpop.f32.mrb[5].mxu0  ;;  %v898_v1 = vpop.f32.mrb[6].mxu1 }
 0x107   :  { %v1395_v2 = vmax.f32 %v1241_v55, %v1244_v57  ;;  %v1086_v3 = vmax.f32 %v896_v58, 0.0  ;;  %v627_v5 = vadd.f32 %v626_v0, %v2393_v23  ;;  %v899_v6 = vadd.f32 %v898_v1, %v2385_v21  ;;  %v628_v7 = vpop.f32.mrb[6].mxu0  ;;  %v900_v8 = vpop.f32.mrb[7].mxu1  ;;  %v2489_v55 = vld [vmem:[%s3003_s3 + $0x60] sm:$0xff] }
 0x108   :  { %v1084_v9 = vmax.f32 %v625_v63, 0.0  ;;  %v629_v12 = vadd.f32 %v628_v7, %v2389_v22  ;;  %v630_v13 = vpop.f32.mrb[7].mxu0  ;;  %v2501_v63 = vld [vmem:[%s3003_s3 + $0x88] sm:$0xff] }
 0x109   :  { %v1248_v14 = vmul.f32 %v2441_v62, %v1086_v3  ;;  %v1085_v15 = vmax.f32 %v627_v5, 0.0  ;;  %v1089_v19 = vmax.f32 %v899_v6, 0.0  ;;  %v631_v25 = vadd.f32 %v630_v13, %v2393_v23  ;;  %v2508_v6 = vld [vmem:[%s3003_s3 + $0x78] sm:$0xff] }
 0x10a   :  { %v1246_v26 = vmul.f32 %v2447_v4, %v1084_v9  ;;  %v1087_v27 = vmax.f32 %v629_v12, 0.0  ;;  %v2515_v12 = vld [vmem:[%s3003_s3 + $0x80] sm:$0xff] }
 0x10b   :  { %v1407_v30 = vmax.f32 %v1406_v56, %v1248_v14  ;;  %v1247_v31 = vmul.f32 %v2454_v10, %v1085_v15  ;;  %v1251_v32 = vmul.f32 %v2459_v11, %v1089_v19  ;;  %v1088_v33 = vmax.f32 %v631_v25, 0.0 }
 0x10c   :  { %v1385_v34 = vmax.f32 %v1384_v61, %v1246_v26  ;;  %v1249_v35 = vmul.f32 %v2466_v24, %v1087_v27  ;;  %v903_v36 = vpop.f32.mrb[8].mxu1  ;;  %v2496_v61 = vld [vmem:[%s3003_s3 + $0x68] sm:$0xff] }
 0x10d   :  { %v1396_v37 = vmax.f32 %v1395_v2, %v1247_v31  ;;  %v1408_v38 = vmax.f32 %v1407_v30, %v1251_v32  ;;  %v1250_v40 = vmul.f32 %v2473_v28, %v1088_v33  ;;  %v904_v42 = vadd.f32 %v903_v36, %v2385_v21  ;;  %v634_v43 = vpop.f32.mrb[8].mxu0  ;;  %v905_v45 = vpop.f32.mrb[9].mxu1 }
 0x10e   :  { %v1386_v46 = vmax.f32 %v1385_v34, %v1249_v35  ;;  %v635_v50 = vadd.f32 %v634_v43, %v2389_v22  ;;  %v636_v51 = vpop.f32.mrb[9].mxu0  ;;  %v906_v52 = vpop.f32.mrb[10].mxu1 }
 0x10f   :  { %v1397_v53 = vmax.f32 %v1396_v37, %v1250_v40  ;;  %v1092_v54 = vmax.f32 %v904_v42, 0.0  ;;  %v637_v56 = vadd.f32 %v636_v51, %v2393_v23  ;;  %v907_v57 = vadd.f32 %v906_v52, %v2385_v21  ;;  %v638_v58 = vpop.f32.mrb[10].mxu0  ;;  %v908_v59 = vpop.f32.mrb[11].mxu1 }
 0x110   :  { %v1090_v60 = vmax.f32 %v635_v50, 0.0  ;;  %v639_v0 = vadd.f32 %v638_v58, %v2389_v22  ;;  %v640_v1 = vpop.f32.mrb[11].mxu0 }
 0x111   :  { %v1254_v2 = vmul.f32 %v2483_v48, %v1092_v54  ;;  %v1091_v3 = vmax.f32 %v637_v56, 0.0  ;;  %v1095_v5 = vmax.f32 %v907_v57, 0.0  ;;  %v641_v7 = vadd.f32 %v640_v1, %v2393_v23 }
 0x112   :  { %v1252_v8 = vmul.f32 %v2489_v55, %v1090_v60  ;;  %v1093_v9 = vmax.f32 %v639_v0, 0.0 }
 0x113   :  { %v1409_v13 = vmax.f32 %v1408_v38, %v1254_v2  ;;  %v1253_v14 = vmul.f32 %v2496_v61, %v1091_v3  ;;  %v1257_v15 = vmul.f32 %v2501_v63, %v1095_v5  ;;  %v1094_v19 = vmax.f32 %v641_v7, 0.0 }
 0x114   :  { %v1387_v25 = vmax.f32 %v1386_v46, %v1252_v8  ;;  %v1255_v26 = vmul.f32 %v2508_v6, %v1093_v9  ;;  %v911_v27 = vpop.f32.mrb[12].mxu1 }
 0x115   :  { %v1398_v30 = vmax.f32 %v1397_v53, %v1253_v14  ;;  %v1410_v31 = vmax.f32 %v1409_v13, %v1257_v15  ;;  %v1256_v32 = vmul.f32 %v2515_v12, %v1094_v19  ;;  %v644_v33 = vpop.f32.mrb[12].mxu0  ;;  %v912_v34 = vadd.f32 %v911_v27, %v2385_v21  ;;  %v913_v35 = vpop.f32.mrb[13].mxu1  ;;  %v1648_v27 = vld [vmem:[%s3004_s4] sm:$0x7] }
 0x116   :  { %v1388_v36 = vmax.f32 %v1387_v25, %v1255_v26  ;;  %v645_v37 = vadd.f32 %v644_v33, %v2389_v22  ;;  %v646_v38 = vpop.f32.mrb[13].mxu0  ;;  %v914_v40 = vpop.f32.mrb[14].mxu1 }
 0x117   :  { %v1411_v42 = vrot.slane %v1410_v31, 4  ;;  %v1399_v43 = vmax.f32 %v1398_v30, %v1256_v32  ;;  %v1098_v45 = vmax.f32 %v912_v34, 0.0  ;;  %v647_v46 = vadd.f32 %v646_v38, %v2393_v23  ;;  %v648_v50 = vpop.f32.mrb[14].mxu0  ;;  %v916_v51 = vpop.f32.mrb[15].mxu1 }
 0x118   :  { %v1389_v52 = vrot.slane %v1388_v36, 4  ;;  %v1096_v53 = vmax.f32 %v645_v37, 0.0  ;;  %v649_v54 = vadd.f32 %v648_v50, %v2389_v22  ;;  %v915_v56 = vadd.f32 %v914_v40, %v2385_v21  ;;  %v650_v57 = vpop.f32.mrb[15].mxu0 }
 0x119   :  { %v1412_v58 = vmax.f32 %v1410_v31, %v1411_v42  ;;  %v1400_v59 = vrot.slane %v1399_v43, 4  ;;  %v1260_v60 = vmul.f32 %v2400_v29, %v1098_v45  ;;  %v1097_v2 = vmax.f32 %v647_v46, 0.0 }
 0x11a   :  { %v1099_v0 = vmax.f32 %v649_v54, 0.0  ;;  %v1101_v1 = vmax.f32 %v915_v56, 0.0  ;;  %v651_v3 = vadd.f32 %v650_v57, %v2393_v23  ;;  %v1390_v5 = vmax.f32 %v1388_v36, %v1389_v52 }
 0x11b   :  { %v1258_v7 = vmul.f32 %v2413_v41, %v1096_v53  ;;  %v1413_v14 = vrot.slane %v1412_v58, 2  ;;  %v1401_v30 = vmax.f32 %v1399_v43, %v1400_v59  ;;  %v1259_v36 = vmul.f32 %v2425_v47, %v1097_v2 }
 0x11c   :  { %v1261_v8 = vmul.f32 %v2419_v44, %v1099_v0  ;;  %v1263_v9 = vmul.f32 %v2408_v39, %v1101_v1  ;;  %v919_v13 = vpop.f32.mrb[16].mxu1  ;;  %v1100_v15 = vmax.f32 %v651_v3, 0.0  ;;  %v1391_v45 = vrot.slane %v1390_v5, 2 }
 0x11d   :  { %v920_v19 = vadd.f32 %v919_v13, %v2385_v21  ;;  %v654_v25 = vpop.f32.mrb[16].mxu0  ;;  %v921_v26 = vpop.f32.mrb[17].mxu1  ;;  %v1414_v52 = vmax.f32 %v1412_v58, %v1413_v14  ;;  %v2542_v53 = vrot.slane %v1648_v27, %v126_v17  ;;  %v1402_v57 = vrot.slane %v1401_v30, 2 }
 0x11e   :  { %v1417_v31 = vmax.f32 %v1258_v7, %v1261_v8  ;;  %v1439_v32 = vmax.f32 %v1260_v60, %v1263_v9  ;;  %v655_v33 = vadd.f32 %v654_v25, %v2389_v22  ;;  %v656_v34 = vpop.f32.mrb[17].mxu0  ;;  %v922_v35 = vpop.f32.mrb[18].mxu1  ;;  %v1262_v37 = vmul.f32 %v2430_v49, %v1100_v15 }
 0x11f   :  { %v1104_v38 = vmax.f32 %v920_v19, 0.0  ;;  %v658_v40 = vpop.f32.mrb[18].mxu0  ;;  %v924_v42 = vpop.f32.mrb[19].mxu1  ;;  %v657_v50 = vadd.f32 %v656_v34, %v2393_v23  ;;  %v923_v51 = vadd.f32 %v922_v35, %v2385_v21  ;;  %v2548_v1 = vrot.slane %v1648_v27, %v118_v18 }
 0x120   :  { %v1102_v46 = vmax.f32 %v655_v33, 0.0  ;;  %v660_v43 = vpop.f32.mrb[19].mxu0  ;;  %v1428_v54 = vmax.f32 %v1259_v36, %v1262_v37  ;;  %v2552_v2 = vrot.slane %v1648_v27, %v122_v20  ;;  %v659_v17 = vadd.f32 %v658_v40, %v2389_v22 }
 0x121   :  { %v1266_v56 = vmul.f32 %v2441_v62, %v1104_v38  ;;  %v1103_v60 = vmax.f32 %v657_v50, 0.0  ;;  %v1107_v0 = vmax.f32 %v923_v51, 0.0  ;;  %v1392_v3 = vmax.f32 %v1390_v5, %v1391_v45 }
 0x122   :  { %v1264_v59 = vmul.f32 %v2447_v4, %v1102_v46  ;;  %v1415_v14 = vrot.slane %v1414_v52, 1  ;;  %v1105_v15 = vmax.f32 %v659_v17, 0.0  ;;  %v661_v19 = vadd.f32 %v660_v43, %v2393_v23 }
 0x123   :  { %v1440_v58 = vmax.f32 %v1439_v32, %v1266_v56  ;;  %v1265_v8 = vmul.f32 %v2454_v10, %v1103_v60  ;;  %v1269_v9 = vmul.f32 %v2459_v11, %v1107_v0  ;;  %v1403_v20 = vmax.f32 %v1401_v30, %v1402_v57 }
 0x124   :  { %v1418_v7 = vmax.f32 %v1417_v31, %v1264_v59  ;;  %v927_v13 = vpop.f32.mrb[20].mxu1  ;;  %v1267_v33 = vmul.f32 %v2466_v24, %v1105_v15  ;;  %v1106_v34 = vmax.f32 %v661_v19, 0.0  ;;  %v1393_v40 = vrot.slane %v1392_v3, 1 }
 0x125   :  { %v928_v18 = vadd.f32 %v927_v13, %v2385_v21  ;;  %v664_v25 = vpop.f32.mrb[20].mxu0  ;;  %v929_v16 = vpop.f32.mrb[21].mxu1  ;;  %v1429_v26 = vmax.f32 %v1428_v54, %v1265_v8  ;;  %v1441_v27 = vmax.f32 %v1440_v58, %v1269_v9  ;;  %v1416_v0 = vmax.f32 %v1414_v52, %v1415_v14 }
 0x126   :  { %v665_v32 = vadd.f32 %v664_v25, %v2389_v22  ;;  %v666_v5 = vpop.f32.mrb[21].mxu0  ;;  %v930_v31 = vpop.f32.mrb[22].mxu1  ;;  %v1419_v50 = vmax.f32 %v1418_v7, %v1267_v33  ;;  %v1268_v51 = vmul.f32 %v2473_v28, %v1106_v34  ;;  %v1404_v25 = vrot.slane %v1403_v20, 1 }
 0x127   :  { %v1110_v35 = vmax.f32 %v928_v18, 0.0  ;;  %v667_v36 = vadd.f32 %v666_v5, %v2393_v23  ;;  %v668_v37 = vpop.f32.mrb[22].mxu0  ;;  %v932_v38 = vpop.f32.mrb[23].mxu1  ;;  %v931_v45 = vadd.f32 %v930_v31, %v2385_v21  ;;  %v2571_v18 = vmax.f32 %v1392_v3, %v1393_v40 }
 0x128   :  { %v1108_v42 = vmax.f32 %v665_v32, 0.0  ;;  %v669_v30 = vadd.f32 %v668_v37, %v2389_v22  ;;  %v670_v46 = vpop.f32.mrb[23].mxu0  ;;  %v1430_v58 = vmax.f32 %v1429_v26, %v1268_v51 }
 0x129   :  { %v1272_v43 = vmul.f32 %v2483_v48, %v1110_v35  ;;  %v1109_v54 = vmax.f32 %v667_v36, 0.0  ;;  %v1113_v57 = vmax.f32 %v931_v45, 0.0  ;;  %v671_v60 = vadd.f32 %v670_v46, %v2393_v23 }
 0x12a   :  { %v1270_v56 = vmul.f32 %v2489_v55, %v1108_v42  ;;  %v1111_v59 = vmax.f32 %v669_v30, 0.0  ;;  %v2577_v35 = vmul.f32 %v2542_v53, %v1416_v0 }
 0x12b   :  { %v1442_v17 = vmax.f32 %v1441_v27, %v1272_v43  ;;  %v1271_v8 = vmul.f32 %v2496_v61, %v1109_v54  ;;  %v1275_v13 = vmul.f32 %v2501_v63, %v1113_v57  ;;  %v1112_v15 = vmax.f32 %v671_v60, 0.0 }
 0x12c   :  { %v1420_v9 = vmax.f32 %v1419_v50, %v1270_v56  ;;  %v1273_v7 = vmul.f32 %v2508_v6, %v1111_v59  ;;  %v935_v19 = vpop.f32.mrb[24].mxu1  ;;  %v1405_v57 = vmax.f32 %v1403_v20, %v1404_v25 }
 0x12d   :  { %v1431_v16 = vmax.f32 %v1430_v58, %v1271_v8  ;;  %v674_v32 = vpop.f32.mrb[24].mxu0  ;;  %v936_v5 = vadd.f32 %v935_v19, %v2385_v21  ;;  %v937_v31 = vpop.f32.mrb[25].mxu1  ;;  %v1443_v52 = vmax.f32 %v1442_v17, %v1275_v13  ;;  %v1274_v26 = vmul.f32 %v2515_v12, %v1112_v15 }
 0x12e   :  { %v1421_v14 = vmax.f32 %v1420_v9, %v1273_v7  ;;  %v675_v27 = vadd.f32 %v674_v32, %v2389_v22  ;;  %v676_v33 = vpop.f32.mrb[25].mxu0  ;;  %v938_v34 = vpop.f32.mrb[26].mxu1 }
 0x12f   :  { %v1116_v36 = vmax.f32 %v936_v5, 0.0  ;;  %v677_v3 = vadd.f32 %v676_v33, %v2393_v23  ;;  %v678_v37 = vpop.f32.mrb[26].mxu0  ;;  %v939_v38 = vadd.f32 %v938_v34, %v2385_v21  ;;  %v940_v40 = vpop.f32.mrb[27].mxu1  ;;  %v1444_v42 = vrot.slane %v1443_v52, 4 }
 0x130   :  { %v1422_v45 = vrot.slane %v1421_v14, 4  ;;  %v1432_v30 = vmax.f32 %v1431_v16, %v1274_v26  ;;  %v1114_v46 = vmax.f32 %v675_v27, 0.0  ;;  %v680_v50 = vpop.f32.mrb[27].mxu0  ;;  %v679_v54 = vadd.f32 %v678_v37, %v2389_v22 }
 0x131   :  { %v1278_v51 = vmul.f32 %v2400_v29, %v1116_v36  ;;  %v1115_v43 = vmax.f32 %v677_v3, 0.0  ;;  %v1119_v56 = vmax.f32 %v939_v38, 0.0  ;;  %v1445_v59 = vmax.f32 %v1443_v52, %v1444_v42 }
 0x132   :  { %v1423_v60 = vmax.f32 %v1421_v14, %v1422_v45  ;;  %v1433_v0 = vrot.slane %v1432_v30, 4  ;;  %v1276_v58 = vmul.f32 %v2413_v41, %v1114_v46  ;;  %v1117_v17 = vmax.f32 %v679_v54, 0.0 }
 0x133   :  { %v1281_v8 = vmul.f32 %v2408_v39, %v1119_v56  ;;  %v681_v9 = vadd.f32 %v680_v50, %v2393_v23  ;;  %v1446_v13 = vrot.slane %v1445_v59, 2  ;;  %v1277_v19 = vmul.f32 %v2425_v47, %v1115_v43 }
 0x134   :  { %v1424_v7 = vrot.slane %v1423_v60, 2  ;;  %v1434_v15 = vmax.f32 %v1432_v30, %v1433_v0  ;;  %v943_v16 = vpop.f32.mrb[28].mxu1  ;;  %v1279_v32 = vmul.f32 %v2419_v44, %v1117_v17 }
 0x135   :  { %v1472_v5 = vmax.f32 %v1278_v51, %v1281_v8  ;;  %v1118_v20 = vmax.f32 %v681_v9, 0.0  ;;  %v944_v25 = vadd.f32 %v943_v16, %v2385_v21  ;;  %v684_v31 = vpop.f32.mrb[28].mxu0  ;;  %v945_v52 = vpop.f32.mrb[29].mxu1  ;;  %v1447_v14 = vmax.f32 %v1445_v59, %v1446_v13 }
 0x136   :  { %v1425_v26 = vmax.f32 %v1423_v60, %v1424_v7  ;;  %v1435_v27 = vrot.slane %v1434_v15, 2  ;;  %v685_v33 = vadd.f32 %v684_v31, %v2389_v22  ;;  %v686_v34 = vpop.f32.mrb[29].mxu0  ;;  %v946_v36 = vpop.f32.mrb[30].mxu1  ;;  %v1450_v3 = vmax.f32 %v1276_v58, %v1279_v32 }
 0x137   :  { %v1280_v37 = vmul.f32 %v2430_v49, %v1118_v20  ;;  %v1122_v38 = vmax.f32 %v944_v25, 0.0  ;;  %v687_v40 = vadd.f32 %v686_v34, %v2393_v23  ;;  %v688_v42 = vpop.f32.mrb[30].mxu0  ;;  %v948_v45 = vpop.f32.mrb[31].mxu1  ;;  %v1448_v30 = vrot.slane %v1447_v14, 1 }
 0x138   :  { %v1426_v46 = vrot.slane %v1425_v26, 1  ;;  %v1436_v50 = vmax.f32 %v1434_v15, %v1435_v27  ;;  %v1120_v51 = vmax.f32 %v685_v33, 0.0  ;;  %v690_v43 = vpop.f32.mrb[31].mxu0  ;;  %v947_v60 = vadd.f32 %v946_v36, %v2385_v21 }
 0x139   :  { %v1461_v54 = vmax.f32 %v1277_v19, %v1280_v37  ;;  %v1284_v56 = vmul.f32 %v2441_v62, %v1122_v38  ;;  %v1121_v59 = vmax.f32 %v687_v40, 0.0  ;;  %v1449_v0 = vmax.f32 %v1447_v14, %v1448_v30 }
 0x13a   :  { %v1427_v58 = vmax.f32 %v1425_v26, %v1426_v46  ;;  %v1437_v17 = vrot.slane %v1436_v50, 1  ;;  %v1282_v8 = vmul.f32 %v2447_v4, %v1120_v51  ;;  %v1125_v7 = vmax.f32 %v947_v60, 0.0 }
 0x13b   :  { %v1473_v9 = vmax.f32 %v1472_v5, %v1284_v56  ;;  %v1283_v13 = vmul.f32 %v2454_v10, %v1121_v59  ;;  %v689_v15 = vadd.f32 %v688_v42, %v2389_v22  ;;  %v1665_v16 = vmul.f32 %v2548_v1, %v2571_v18 }
 0x13c   :  { %v1668_v19 = vmul.f32 %v2548_v1, %v1427_v58  ;;  %v1438_v32 = vmax.f32 %v1436_v50, %v1437_v17  ;;  %v1451_v20 = vmax.f32 %v1450_v3, %v1282_v8  ;;  %v951_v25 = vpop.f32.mrb[32].mxu1  ;;  %v1287_v52 = vmul.f32 %v2459_v11, %v1125_v7 }
 0x13d   :  { %v1462_v31 = vmax.f32 %v1461_v54, %v1283_v13  ;;  %v1123_v14 = vmax.f32 %v689_v15, 0.0  ;;  %v691_v26 = vadd.f32 %v690_v43, %v2393_v23  ;;  %v694_v5 = vpop.f32.mrb[32].mxu0  ;;  %v953_v27 = vpop.f32.mrb[33].mxu1  ;;  %v2603_v33 = vmul.f32 %v2552_v2, %v1405_v57 }
 0x13e   :  { %v2606_v34 = vmul.f32 %v2542_v53, %v1449_v0  ;;  %v1713_v18 = vrot.slane %v1668_v19, 7  ;;  %v952_v36 = vadd.f32 %v951_v25, %v2385_v21  ;;  %v696_v37 = vpop.f32.mrb[33].mxu0  ;;  %v954_v3 = vpop.f32.mrb[34].mxu1  ;;  %v1474_v38 = vmax.f32 %v1473_v9, %v1287_v52 }
 0x13f   :  { %v1285_v40 = vmul.f32 %v2466_v24, %v1123_v14  ;;  %v1124_v42 = vmax.f32 %v691_v26, 0.0  ;;  %v695_v45 = vadd.f32 %v694_v5, %v2389_v22  ;;  %v698_v30 = vpop.f32.mrb[34].mxu0  ;;  %v956_v46 = vpop.f32.mrb[35].mxu1  ;;  %v2612_v50 = vmul.f32 %v2552_v2, %v1438_v32 }
 0x140   :  { %v1128_v57 = vmax.f32 %v952_v36, 0.0  ;;  %v697_v51 = vadd.f32 %v696_v37, %v2393_v23  ;;  %v955_v43 = vadd.f32 %v954_v3, %v2385_v21  ;;  %v700_v54 = vpop.f32.mrb[35].mxu0  ;;  %v699_v0 = vadd.f32 %v698_v30, %v2389_v22 }
 0x141   :  { %v1452_v56 = vmax.f32 %v1451_v20, %v1285_v40  ;;  %v1286_v59 = vmul.f32 %v2473_v28, %v1124_v42  ;;  %v1126_v60 = vmax.f32 %v695_v45, 0.0  ;;  %v701_v9 = vadd.f32 %v700_v54, %v2393_v23 }
 0x142   :  { %v1290_v58 = vmul.f32 %v2483_v48, %v1128_v57  ;;  %v1127_v17 = vmax.f32 %v697_v51, 0.0  ;;  %v1131_v8 = vmax.f32 %v955_v43, 0.0  ;;  %v1129_v15 = vmax.f32 %v699_v0, 0.0 }
 0x143   :  { %v1463_v13 = vmax.f32 %v1462_v31, %v1286_v59  ;;  %v1288_v7 = vmul.f32 %v2489_v55, %v1126_v60  ;;  %v2622_v19 = vsel %vm1714_vm1, %v1713_v18, %v1665_v16  ;;  %v1130_v52 = vmax.f32 %v701_v9, 0.0 }
 0x144   :  { %v1475_v32 = vmax.f32 %v1474_v38, %v1290_v58  ;;  %v1289_v20 = vmul.f32 %v2496_v61, %v1127_v17  ;;  %v1293_v25 = vmul.f32 %v2501_v63, %v1131_v8  ;;  %v959_v14 = vpop.f32.mrb[36].mxu1  ;;  %v1734_v26 = vrot.slane %v2612_v50, 7 }
 0x145   :  { %v1453_v5 = vmax.f32 %v1452_v56, %v1288_v7  ;;  %v1291_v27 = vmul.f32 %v2508_v6, %v1129_v15  ;;  %v704_v36 = vpop.f32.mrb[36].mxu0  ;;  %v960_v31 = vadd.f32 %v959_v14, %v2385_v21  ;;  %v961_v37 = vpop.f32.mrb[37].mxu1  ;;  %v1292_v16 = vmul.f32 %v2515_v12, %v1130_v52 }
 0x146   :  { %v1464_v3 = vmax.f32 %v1463_v13, %v1289_v20  ;;  %v1476_v40 = vmax.f32 %v1475_v32, %v1293_v25  ;;  %v705_v18 = vadd.f32 %v704_v36, %v2389_v22  ;;  %v706_v38 = vpop.f32.mrb[37].mxu0  ;;  %v962_v42 = vpop.f32.mrb[38].mxu1 }
 0x147   :  { %v1454_v45 = vmax.f32 %v1453_v5, %v1291_v27  ;;  %v1134_v30 = vmax.f32 %v960_v31, 0.0  ;;  %v707_v46 = vadd.f32 %v706_v38, %v2393_v23  ;;  %v708_v50 = vpop.f32.mrb[38].mxu0  ;;  %v963_v57 = vadd.f32 %v962_v42, %v2385_v21  ;;  %v964_v51 = vpop.f32.mrb[39].mxu1 }
 0x148   :  { %v1477_v43 = vrot.slane %v1476_v40, 4  ;;  %v1465_v54 = vmax.f32 %v1464_v3, %v1292_v16  ;;  %v1132_v56 = vmax.f32 %v705_v18, 0.0  ;;  %v709_v59 = vadd.f32 %v708_v50, %v2389_v22  ;;  %v710_v60 = vpop.f32.mrb[39].mxu0 }
 0x149   :  { %v1455_v0 = vrot.slane %v1454_v45, 4  ;;  %v1296_v58 = vmul.f32 %v2400_v29, %v1134_v30  ;;  %v1133_v17 = vmax.f32 %v707_v46, 0.0  ;;  %v1137_v8 = vmax.f32 %v963_v57, 0.0 }
 0x14a   :  { %v1478_v9 = vmax.f32 %v1476_v40, %v1477_v43  ;;  %v1466_v13 = vrot.slane %v1465_v54, 4  ;;  %v1294_v7 = vmul.f32 %v2413_v41, %v1132_v56  ;;  %v1135_v15 = vmax.f32 %v709_v59, 0.0 }
 0x14b   :  { %v1456_v32 = vmax.f32 %v1454_v45, %v1455_v0  ;;  %v1295_v20 = vmul.f32 %v2425_v47, %v1133_v17  ;;  %v1299_v25 = vmul.f32 %v2408_v39, %v1137_v8  ;;  %v711_v52 = vadd.f32 %v710_v60, %v2393_v23 }
 0x14c   :  { %v1479_v14 = vrot.slane %v1478_v9, 2  ;;  %v1467_v5 = vmax.f32 %v1465_v54, %v1466_v13  ;;  %v1297_v27 = vmul.f32 %v2419_v44, %v1135_v15  ;;  %v967_v36 = vpop.f32.mrb[40].mxu1  ;;  %v2642_v31 = vsel %vm1714_vm1, %v1734_v26, %v2603_v33 }
 0x14d   :  { %v1457_v37 = vrot.slane %v1456_v32, 2  ;;  %v1505_v3 = vmax.f32 %v1296_v58, %v1299_v25  ;;  %v1136_v40 = vmax.f32 %v711_v52, 0.0  ;;  %v968_v16 = vadd.f32 %v967_v36, %v2385_v21  ;;  %v714_v18 = vpop.f32.mrb[40].mxu0  ;;  %v969_v38 = vpop.f32.mrb[41].mxu1 }
 0x14e   :  { %v1480_v42 = vmax.f32 %v1478_v9, %v1479_v14  ;;  %v1468_v45 = vrot.slane %v1467_v5, 2  ;;  %v1483_v30 = vmax.f32 %v1294_v7, %v1297_v27  ;;  %v715_v46 = vadd.f32 %v714_v18, %v2389_v22  ;;  %v716_v50 = vpop.f32.mrb[41].mxu0  ;;  %v970_v57 = vpop.f32.mrb[42].mxu1 }
 0x14f   :  { %v1458_v51 = vmax.f32 %v1456_v32, %v1457_v37  ;;  %v1298_v43 = vmul.f32 %v2430_v49, %v1136_v40  ;;  %v1140_v54 = vmax.f32 %v968_v16, 0.0  ;;  %v717_v33 = vadd.f32 %v716_v50, %v2393_v23  ;;  %v718_v26 = vpop.f32.mrb[42].mxu0  ;;  %v972_v56 = vpop.f32.mrb[43].mxu1 }
 0x150   :  { %v1481_v59 = vrot.slane %v1480_v42, 1  ;;  %v1469_v60 = vmax.f32 %v1467_v5, %v1468_v45  ;;  %v1138_v0 = vmax.f32 %v715_v46, 0.0  ;;  %v971_v58 = vadd.f32 %v970_v57, %v2385_v21  ;;  %v720_v17 = vpop.f32.mrb[43].mxu0 }
 0x151   :  { %v1459_v8 = vrot.slane %v1458_v51, 1  ;;  %v1494_v9 = vmax.f32 %v1295_v20, %v1298_v43  ;;  %v1302_v13 = vmul.f32 %v2441_v62, %v1140_v54  ;;  %v1139_v7 = vmax.f32 %v717_v33, 0.0 }
 0x152   :  { %v1482_v15 = vmax.f32 %v1480_v42, %v1481_v59  ;;  %v1470_v32 = vrot.slane %v1469_v60, 1  ;;  %v1300_v25 = vmul.f32 %v2447_v4, %v1138_v0  ;;  %v1143_v52 = vmax.f32 %v971_v58, 0.0 }
 0x153   :  { %v1460_v14 = vmax.f32 %v1458_v51, %v1459_v8  ;;  %v1506_v27 = vmax.f32 %v1505_v3, %v1302_v13  ;;  %v1301_v36 = vmul.f32 %v2454_v10, %v1139_v7  ;;  %v719_v5 = vadd.f32 %v718_v26, %v2389_v22 }
 0x154   :  { %v2654_v37 = vmul.f32 %v2542_v53, %v1482_v15  ;;  %v1471_v40 = vmax.f32 %v1469_v60, %v1470_v32  ;;  %v1484_v16 = vmax.f32 %v1483_v30, %v1300_v25  ;;  %v1305_v20 = vmul.f32 %v2459_v11, %v1143_v52  ;;  %v975_v18 = vpop.f32.mrb[44].mxu1 }
 0x155   :  { %v1671_v38 = vmul.f32 %v2548_v1, %v1460_v14  ;;  %v1495_v42 = vmax.f32 %v1494_v9, %v1301_v36  ;;  %v1141_v45 = vmax.f32 %v719_v5, 0.0  ;;  %v721_v46 = vadd.f32 %v720_v17, %v2393_v23  ;;  %v724_v50 = vpop.f32.mrb[44].mxu0  ;;  %v977_v3 = vpop.f32.mrb[45].mxu1 }
 0x156   :  { %v1748_v57 = vrot.slane %v2606_v34, 7  ;;  %v1750_v51 = vrot.slane %v2654_v37, 6  ;;  %v1507_v43 = vmax.f32 %v1506_v27, %v1305_v20  ;;  %v976_v54 = vadd.f32 %v975_v18, %v2385_v21  ;;  %v726_v33 = vpop.f32.mrb[45].mxu0  ;;  %v978_v30 = vpop.f32.mrb[46].mxu1 }
 0x157   :  { %v1716_v26 = vrot.slane %v1671_v38, 6  ;;  %v1303_v56 = vmul.f32 %v2466_v24, %v1141_v45  ;;  %v1142_v59 = vmax.f32 %v721_v46, 0.0  ;;  %v725_v60 = vadd.f32 %v724_v50, %v2389_v22  ;;  %v728_v0 = vpop.f32.mrb[46].mxu0  ;;  %v980_v58 = vpop.f32.mrb[47].mxu1 }
 0x158   :  { %v2665_v17 = vmul.f32 %v2552_v2, %v1471_v40  ;;  %v1146_v8 = vmax.f32 %v976_v54, 0.0  ;;  %v727_v9 = vadd.f32 %v726_v33, %v2393_v23  ;;  %v979_v13 = vadd.f32 %v978_v30, %v2385_v21  ;;  %v730_v7 = vpop.f32.mrb[47].mxu0 }
 0x159   :  { %v1485_v15 = vmax.f32 %v1484_v16, %v1303_v56  ;;  %v1304_v32 = vmul.f32 %v2473_v28, %v1142_v59  ;;  %v1144_v25 = vmax.f32 %v725_v60, 0.0  ;;  %v729_v52 = vadd.f32 %v728_v0, %v2389_v22 }
 0x15a   :  { %v1308_v14 = vmul.f32 %v2483_v48, %v1146_v8  ;;  %v1145_v27 = vmax.f32 %v727_v9, 0.0  ;;  %v1149_v36 = vmax.f32 %v979_v13, 0.0  ;;  %v731_v5 = vadd.f32 %v730_v7, %v2393_v23 }
 0x15b   :  { %v1496_v40 = vmax.f32 %v1495_v42, %v1304_v32  ;;  %v1306_v20 = vmul.f32 %v2489_v55, %v1144_v25  ;;  %v1147_v18 = vmax.f32 %v729_v52, 0.0  ;;  %v2676_v38 = vsel %vm1717_vm2, %v1716_v26, %v2622_v19 }
 0x15c   :  { %v1508_v16 = vmax.f32 %v1507_v43, %v1308_v14  ;;  %v1307_v45 = vmul.f32 %v2496_v61, %v1145_v27  ;;  %v1311_v46 = vmul.f32 %v2501_v63, %v1149_v36  ;;  %v1148_v50 = vmax.f32 %v731_v5, 0.0  ;;  %v983_v3 = vpop.f32.mrb[48].mxu1 }
 0x15d   :  { %v1736_v54 = vrot.slane %v2665_v17, 6  ;;  %v1486_v33 = vmax.f32 %v1485_v15, %v1306_v20  ;;  %v1309_v30 = vmul.f32 %v2508_v6, %v1147_v18  ;;  %v734_v42 = vpop.f32.mrb[48].mxu0  ;;  %v984_v56 = vadd.f32 %v983_v3, %v2385_v21  ;;  %v985_v59 = vpop.f32.mrb[49].mxu1 }
 0x15e   :  { %v1497_v60 = vmax.f32 %v1496_v40, %v1307_v45  ;;  %v1509_v0 = vmax.f32 %v1508_v16, %v1311_v46  ;;  %v1310_v19 = vmul.f32 %v2515_v12, %v1148_v50  ;;  %v735_v43 = vadd.f32 %v734_v42, %v2389_v22  ;;  %v736_v26 = vpop.f32.mrb[49].mxu0  ;;  %v986_v58 = vpop.f32.mrb[50].mxu1 }
 0x15f   :  { %v1487_v8 = vmax.f32 %v1486_v33, %v1309_v30  ;;  %v1152_v9 = vmax.f32 %v984_v56, 0.0  ;;  %v737_v13 = vadd.f32 %v736_v26, %v2393_v23  ;;  %v738_v17 = vpop.f32.mrb[50].mxu0  ;;  %v987_v7 = vadd.f32 %v986_v58, %v2385_v21  ;;  %v988_v15 = vpop.f32.mrb[51].mxu1 }
 0x160   :  { %v1510_v32 = vrot.slane %v1509_v0, 4  ;;  %v1498_v25 = vmax.f32 %v1497_v60, %v1310_v19  ;;  %v1150_v52 = vmax.f32 %v735_v43, 0.0  ;;  %v739_v14 = vadd.f32 %v738_v17, %v2389_v22  ;;  %v740_v27 = vpop.f32.mrb[51].mxu0 }
 0x161   :  { %v1488_v36 = vrot.slane %v1487_v8, 4  ;;  %v1314_v5 = vmul.f32 %v2400_v29, %v1152_v9  ;;  %v1151_v40 = vmax.f32 %v737_v13, 0.0  ;;  %v1155_v20 = vmax.f32 %v987_v7, 0.0 }
 0x162   :  { %v1511_v18 = vmax.f32 %v1509_v0, %v1510_v32  ;;  %v1499_v16 = vrot.slane %v1498_v25, 4  ;;  %v1312_v45 = vmul.f32 %v2413_v41, %v1150_v52  ;;  %v1153_v46 = vmax.f32 %v739_v14, 0.0 }
 0x163   :  { %v1489_v50 = vmax.f32 %v1487_v8, %v1488_v36  ;;  %v1313_v3 = vmul.f32 %v2425_v47, %v1151_v40  ;;  %v1317_v33 = vmul.f32 %v2408_v39, %v1155_v20  ;;  %v741_v30 = vadd.f32 %v740_v27, %v2393_v23 }
 0x164   :  { %v1512_v42 = vrot.slane %v1511_v18, 2  ;;  %v1500_v56 = vmax.f32 %v1498_v25, %v1499_v16  ;;  %v1315_v59 = vmul.f32 %v2419_v44, %v1153_v46  ;;  %v991_v60 = vpop.f32.mrb[52].mxu1  ;;  %v2696_v29 = vsel %vm1717_vm2, %v1736_v54, %v2642_v31 }
 0x165   :  { %v1490_v0 = vrot.slane %v1489_v50, 2  ;;  %v1538_v19 = vmax.f32 %v1314_v5, %v1317_v33  ;;  %v1154_v41 = vmax.f32 %v741_v30, 0.0  ;;  %v992_v43 = vadd.f32 %v991_v60, %v2385_v21  ;;  %v744_v26 = vpop.f32.mrb[52].mxu0  ;;  %v993_v47 = vpop.f32.mrb[53].mxu1 }
 0x166   :  { %v1513_v58 = vmax.f32 %v1511_v18, %v1512_v42  ;;  %v1501_v39 = vrot.slane %v1500_v56, 2  ;;  %v1516_v8 = vmax.f32 %v1312_v45, %v1315_v59  ;;  %v745_v9 = vadd.f32 %v744_v26, %v2389_v22  ;;  %v746_v13 = vpop.f32.mrb[53].mxu0  ;;  %v994_v17 = vpop.f32.mrb[54].mxu1 }
 0x167   :  { %v1491_v44 = vmax.f32 %v1489_v50, %v1490_v0  ;;  %v1316_v7 = vmul.f32 %v2430_v49, %v1154_v41  ;;  %v1158_v15 = vmax.f32 %v992_v43, 0.0  ;;  %v747_v31 = vadd.f32 %v746_v13, %v2393_v23  ;;  %v748_v54 = vpop.f32.mrb[54].mxu0  ;;  %v996_v32 = vpop.f32.mrb[55].mxu1 }
 0x168   :  { %v1514_v25 = vrot.slane %v1513_v58, 1  ;;  %v1502_v52 = vmax.f32 %v1500_v56, %v1501_v39  ;;  %v1156_v14 = vmax.f32 %v745_v9, 0.0  ;;  %v995_v27 = vadd.f32 %v994_v17, %v2385_v21  ;;  %v750_v36 = vpop.f32.mrb[55].mxu0 }
 0x169   :  { %v1492_v5 = vrot.slane %v1491_v44, 1  ;;  %v1527_v40 = vmax.f32 %v1313_v3, %v1316_v7  ;;  %v1320_v20 = vmul.f32 %v2441_v62, %v1158_v15  ;;  %v1157_v18 = vmax.f32 %v747_v31, 0.0 }
 0x16a   :  { %v1515_v16 = vmax.f32 %v1513_v58, %v1514_v25  ;;  %v1503_v45 = vrot.slane %v1502_v52, 1  ;;  %v1318_v49 = vmul.f32 %v2447_v4, %v1156_v14  ;;  %v1161_v46 = vmax.f32 %v995_v27, 0.0 }
 0x16b   :  { %v1493_v50 = vmax.f32 %v1491_v44, %v1492_v5  ;;  %v1539_v33 = vmax.f32 %v1538_v19, %v1320_v20  ;;  %v1319_v30 = vmul.f32 %v2454_v10, %v1157_v18  ;;  %v749_v42 = vadd.f32 %v748_v54, %v2389_v22 }
 0x16c   :  { %v2708_v56 = vmul.f32 %v2542_v53, %v1515_v16  ;;  %v1504_v59 = vmax.f32 %v1502_v52, %v1503_v45  ;;  %v1517_v60 = vmax.f32 %v1516_v8, %v1318_v49  ;;  %v1323_v3 = vmul.f32 %v2459_v11, %v1161_v46  ;;  %v999_v62 = vpop.f32.mrb[56].mxu1 }
 0x16d   :  { %v1674_v0 = vmul.f32 %v2548_v1, %v1493_v50  ;;  %v1528_v41 = vmax.f32 %v1527_v40, %v1319_v30  ;;  %v1159_v43 = vmax.f32 %v749_v42, 0.0  ;;  %v751_v4 = vadd.f32 %v750_v36, %v2393_v23  ;;  %v754_v26 = vpop.f32.mrb[56].mxu0  ;;  %v1001_v19 = vpop.f32.mrb[57].mxu1 }
 0x16e   :  { %v1752_v10 = vrot.slane %v2708_v56, 5  ;;  %v1675_v47 = vmul.f32 %v2552_v2, %v1504_v59  ;;  %v1540_v58 = vmax.f32 %v1539_v33, %v1323_v3  ;;  %v1000_v39 = vadd.f32 %v999_v62, %v2385_v21  ;;  %v756_v9 = vpop.f32.mrb[57].mxu0  ;;  %v1002_v8 = vpop.f32.mrb[58].mxu1 }
 0x16f   :  { %v1719_v13 = vrot.slane %v1674_v0, 5  ;;  %v1321_v11 = vmul.f32 %v2466_v24, %v1159_v43  ;;  %v1160_v17 = vmax.f32 %v751_v4, 0.0  ;;  %v755_v44 = vadd.f32 %v754_v26, %v2389_v22  ;;  %v758_v7 = vpop.f32.mrb[58].mxu0  ;;  %v1004_v15 = vpop.f32.mrb[59].mxu1 }
 0x170   :  { %v1738_v31 = vrot.slane %v1675_v47, 5  ;;  %v1164_v54 = vmax.f32 %v1000_v39, 0.0  ;;  %v757_v32 = vadd.f32 %v756_v9, %v2393_v23  ;;  %v1003_v25 = vadd.f32 %v1002_v8, %v2385_v21  ;;  %v760_v52 = vpop.f32.mrb[59].mxu0 }
 0x171   :  { %v1518_v14 = vmax.f32 %v1517_v60, %v1321_v11  ;;  %v1322_v27 = vmul.f32 %v2473_v28, %v1160_v17  ;;  %v1162_v36 = vmax.f32 %v755_v44, 0.0  ;;  %v759_v5 = vadd.f32 %v758_v7, %v2389_v22 }
 0x172   :  { %v1326_v24 = vmul.f32 %v2483_v48, %v1164_v54  ;;  %v1163_v40 = vmax.f32 %v757_v32, 0.0  ;;  %v1167_v20 = vmax.f32 %v1003_v25, 0.0  ;;  %v761_v18 = vadd.f32 %v760_v52, %v2393_v23  ;;  %v2751_v54 = vld [vmem:[%s3003_s3] sm:$0xff] }
 0x173   :  { %v1529_v16 = vmax.f32 %v1528_v41, %v1322_v27  ;;  %v1324_v45 = vmul.f32 %v2489_v55, %v1162_v36  ;;  %v1165_v49 = vmax.f32 %v759_v5, 0.0  ;;  %v2727_v46 = vsel %vm1720_vm3, %v1719_v13, %v2676_v38  ;;  %v2763_v36 = vld [vmem:[%s3003_s3 + $0x28] sm:$0xff] }
 0x174   :  { %v1541_v50 = vmax.f32 %v1540_v58, %v1326_v24  ;;  %v1325_v28 = vmul.f32 %v2496_v61, %v1163_v40  ;;  %v1329_v33 = vmul.f32 %v2501_v63, %v1167_v20  ;;  %v1166_v30 = vmax.f32 %v761_v18, 0.0  ;;  %v1007_v42 = vpop.f32.mrb[60].mxu1  ;;  %v2770_v18 = vld [vmem:[%s3003_s3 + $0x18] sm:$0xff] }
 0x175   :  { %v1519_v48 = vmax.f32 %v1518_v14, %v1324_v45  ;;  %v1327_v59 = vmul.f32 %v2508_v6, %v1165_v49  ;;  %v764_v60 = vpop.f32.mrb[60].mxu0  ;;  %v1008_v3 = vadd.f32 %v1007_v42, %v2385_v21  ;;  %v1009_v62 = vpop.f32.mrb[61].mxu1  ;;  %v2735_v55 = vsel %vm1720_vm3, %v1738_v31, %v2696_v29  ;;  %v2757_v14 = vld [vmem:[%s3003_s3 + $0x8] sm:$0xff] }
 0x176   :  { %v1530_v38 = vmax.f32 %v1529_v16, %v1325_v28  ;;  %v1542_v0 = vmax.f32 %v1541_v50, %v1329_v33  ;;  %v1328_v41 = vmul.f32 %v2515_v12, %v1166_v30  ;;  %v765_v61 = vadd.f32 %v764_v60, %v2389_v22  ;;  %v766_v63 = vpop.f32.mrb[61].mxu0  ;;  %v1010_v43 = vpop.f32.mrb[62].mxu1  ;;  %v2745_v12 = vld [vmem:[%s3003_s3 + $0x10] sm:$0xff] }
 0x177   :  { %v1520_v4 = vmax.f32 %v1519_v48, %v1327_v59  ;;  %v1170_v26 = vmax.f32 %v1008_v3, 0.0  ;;  %v767_v6 = vadd.f32 %v766_v63, %v2393_v23  ;;  %v768_v19 = vpop.f32.mrb[62].mxu0  ;;  %v1011_v47 = vadd.f32 %v1010_v43, %v2385_v21  ;;  %v1012_v58 = vpop.f32.mrb[63].mxu1 }
 0x178   :  { %v1543_v39 = vrot.slane %v1542_v0, 4  ;;  %v1531_v9 = vmax.f32 %v1530_v38, %v1328_v41  ;;  %v1168_v29 = vmax.f32 %v765_v61, 0.0  ;;  %v769_v8 = vadd.f32 %v768_v19, %v2389_v22  ;;  %v770_v13 = vpop.f32.mrb[63].mxu0 }
 0x179   :  { %v1521_v11 = vrot.slane %v1520_v4, 4  ;;  %v1332_v17 = vmul.f32 %v2745_v12, %v1170_v26  ;;  %v1169_v44 = vmax.f32 %v767_v6, 0.0  ;;  %v1173_v7 = vmax.f32 %v1011_v47, 0.0 }
 0x17a   :  { %v1544_v15 = vmax.f32 %v1542_v0, %v1543_v39  ;;  %v1532_v31 = vrot.slane %v1531_v9, 4  ;;  %v1330_v32 = vmul.f32 %v2751_v54, %v1168_v29  ;;  %v1171_v25 = vmax.f32 %v769_v8, 0.0 }
 0x17b   :  { %v1522_v52 = vmax.f32 %v1520_v4, %v1521_v11  ;;  %v1331_v27 = vmul.f32 %v2757_v14, %v1169_v44  ;;  %v1335_v5 = vmul.f32 %v2763_v36, %v1173_v7  ;;  %v771_v24 = vadd.f32 %v770_v13, %v2393_v23 }
 0x17c   :  { %v1545_v40 = vrot.slane %v1544_v15, 2  ;;  %v1533_v20 = vmax.f32 %v1531_v9, %v1532_v31  ;;  %v1333_v16 = vmul.f32 %v2770_v18, %v1171_v25  ;;  %v1015_v45 = vpop.f32.mrb[64].mxu1  ;;  %v2777_v49 = vsel %vm1714_vm1, %v1748_v57, %v2577_v35  ;;  %v2784_v35 = vld [vmem:[%s3003_s3 + $0x20] sm:$0xff] }
 0x17d   :  { %v1523_v50 = vrot.slane %v1522_v52, 2  ;;  %v1571_v28 = vmax.f32 %v1332_v17, %v1335_v5  ;;  %v1172_v33 = vmax.f32 %v771_v24, 0.0  ;;  %v1016_v30 = vadd.f32 %v1015_v45, %v2385_v21  ;;  %v774_v42 = vpop.f32.mrb[64].mxu0  ;;  %v1017_v48 = vpop.f32.mrb[65].mxu1  ;;  %v2792_v9 = vld [vmem:[%s3003_s3 + $0x40] sm:$0xff]  ;;  %v2798_v17 = vld [vmem:[%s3003_s3 + $0x30] sm:$0xff] }
 0x17e   :  { %v1546_v59 = vmax.f32 %v1544_v15, %v1545_v40  ;;  %v1534_v60 = vrot.slane %v1533_v20, 2  ;;  %v1549_v3 = vmax.f32 %v1330_v32, %v1333_v16  ;;  %v775_v62 = vadd.f32 %v774_v42, %v2389_v22  ;;  %v776_v38 = vpop.f32.mrb[65].mxu0  ;;  %v1018_v0 = vpop.f32.mrb[66].mxu1  ;;  %v2804_v32 = vld [vmem:[%s3003_s3 + $0x38] sm:$0xff] }
 0x17f   :  { %v1524_v41 = vmax.f32 %v1522_v52, %v1523_v50  ;;  %v1334_v34 = vmul.f32 %v2784_v35, %v1172_v33  ;;  %v1176_v57 = vmax.f32 %v1016_v30, 0.0  ;;  %v777_v61 = vadd.f32 %v776_v38, %v2393_v23  ;;  %v778_v63 = vpop.f32.mrb[66].mxu0  ;;  %v1020_v43 = vpop.f32.mrb[67].mxu1  ;;  %v2811_v24 = vld [vmem:[%s3003_s3 + $0x58] sm:$0xff] }
 0x180   :  { %v1547_v4 = vrot.slane %v1546_v59, 1  ;;  %v1535_v26 = vmax.f32 %v1533_v20, %v1534_v60  ;;  %v1174_v6 = vmax.f32 %v775_v62, 0.0  ;;  %v1019_v19 = vadd.f32 %v1018_v0, %v2385_v21  ;;  %v780_v47 = vpop.f32.mrb[67].mxu0 }
 0x181   :  { %v1525_v58 = vrot.slane %v1524_v41, 1  ;;  %v1560_v39 = vmax.f32 %v1331_v27, %v1334_v34  ;;  %v1338_v29 = vmul.f32 %v2792_v9, %v1176_v57  ;;  %v1175_v8 = vmax.f32 %v777_v61, 0.0 }
 0x182   :  { %v1548_v13 = vmax.f32 %v1546_v59, %v1547_v4  ;;  %v1536_v11 = vrot.slane %v1535_v26, 1  ;;  %v1336_v44 = vmul.f32 %v2798_v17, %v1174_v6  ;;  %v1179_v7 = vmax.f32 %v1019_v19, 0.0 }
 0x183   :  { %v1526_v15 = vmax.f32 %v1524_v41, %v1525_v58  ;;  %v1572_v31 = vmax.f32 %v1571_v28, %v1338_v29  ;;  %v1337_v25 = vmul.f32 %v2804_v32, %v1175_v8  ;;  %v779_v52 = vadd.f32 %v778_v63, %v2389_v22  ;;  %v2822_v41 = vld [vmem:[%s3003_s3 + $0x48] sm:$0xff]  ;;  %v2836_v29 = vld [vmem:[%s3003_s3 + $0x70] sm:$0xff] }
 0x184   :  { %v1537_v27 = vmax.f32 %v1535_v26, %v1536_v11  ;;  %v1550_v5 = vmax.f32 %v1549_v3, %v1336_v44  ;;  %v1341_v40 = vmul.f32 %v2811_v24, %v1179_v7  ;;  %v781_v20 = vadd.f32 %v780_v47, %v2393_v23  ;;  %v1023_v16 = vpop.f32.mrb[68].mxu1  ;;  %v2829_v26 = vld [vmem:[%s3003_s3 + $0x50] sm:$0xff] }
 0x185   :  { %v1677_v45 = vmul.f32 %v2548_v1, %v1526_v15  ;;  %v1561_v50 = vmax.f32 %v1560_v39, %v1337_v25  ;;  %v1177_v28 = vmax.f32 %v779_v52, 0.0  ;;  %v1024_v33 = vadd.f32 %v1023_v16, %v2385_v21  ;;  %v784_v30 = vpop.f32.mrb[68].mxu0  ;;  %v1025_v42 = vpop.f32.mrb[69].mxu1  ;;  %v2843_v15 = vld [vmem:[%s3003_s3 + $0x60] sm:$0xff] }
 0x186   :  { %v1678_v48 = vmul.f32 %v2552_v2, %v1537_v27  ;;  %v1573_v59 = vmax.f32 %v1572_v31, %v1341_v40  ;;  %v1178_v60 = vmax.f32 %v781_v20, 0.0  ;;  %v785_v3 = vadd.f32 %v784_v30, %v2389_v22  ;;  %v786_v62 = vpop.f32.mrb[69].mxu0  ;;  %v1026_v38 = vpop.f32.mrb[70].mxu1 }
 0x187   :  { %v1722_v0 = vrot.slane %v1677_v45, 4  ;;  %v1339_v34 = vmul.f32 %v2822_v41, %v1177_v28  ;;  %v1182_v57 = vmax.f32 %v1024_v33, 0.0  ;;  %v787_v61 = vadd.f32 %v786_v62, %v2393_v23  ;;  %v788_v63 = vpop.f32.mrb[70].mxu0  ;;  %v1028_v43 = vpop.f32.mrb[71].mxu1 }
 0x188   :  { %v1740_v4 = vrot.slane %v1678_v48, 4  ;;  %v1340_v6 = vmul.f32 %v2829_v26, %v1178_v60  ;;  %v1180_v19 = vmax.f32 %v785_v3, 0.0  ;;  %v1027_v47 = vadd.f32 %v1026_v38, %v2385_v21  ;;  %v790_v58 = vpop.f32.mrb[71].mxu0 }
 0x189   :  { %v1551_v39 = vmax.f32 %v1550_v5, %v1339_v34  ;;  %v1344_v8 = vmul.f32 %v2836_v29, %v1182_v57  ;;  %v1181_v11 = vmax.f32 %v787_v61, 0.0  ;;  %v789_v44 = vadd.f32 %v788_v63, %v2389_v22  ;;  %v2850_v5 = vld [vmem:[%s3003_s3 + $0x68] sm:$0xff] }
 0x18a   :  { %v1562_v7 = vmax.f32 %v1561_v50, %v1340_v6  ;;  %v1342_v31 = vmul.f32 %v2843_v15, %v1180_v19  ;;  %v1185_v25 = vmax.f32 %v1027_v47, 0.0  ;;  %v791_v52 = vadd.f32 %v790_v58, %v2393_v23  ;;  %v2859_v50 = vld [vmem:[%s3003_s3 + $0x88] sm:$0xff] }
 0x18b   :  { %v1574_v27 = vmax.f32 %v1573_v59, %v1344_v8  ;;  %v1343_v40 = vmul.f32 %v2850_v5, %v1181_v11  ;;  %v1183_v20 = vmax.f32 %v789_v44, 0.0  ;;  %v2854_v16 = vmul.f32 %v2542_v53, %v1548_v13  ;;  %v2869_v13 = vld [vmem:[%s3003_s3 + $0x78] sm:$0xff] }
 0x18c   :  { %v1552_v45 = vmax.f32 %v1551_v39, %v1342_v31  ;;  %v1347_v28 = vmul.f32 %v2859_v50, %v1185_v25  ;;  %v1184_v33 = vmax.f32 %v791_v52, 0.0  ;;  %v1031_v30 = vpop.f32.mrb[72].mxu1  ;;  %v2864_v42 = vsel %vm1723_vm4, %v1722_v0, %v2727_v46  ;;  %v2880_v46 = vld [vmem:[%s3003_s3 + $0x80] sm:$0xff] }
 0x18d   :  { %v1563_v48 = vmax.f32 %v1562_v7, %v1343_v40  ;;  %v1345_v59 = vmul.f32 %v2869_v13, %v1183_v20  ;;  %v794_v60 = vpop.f32.mrb[72].mxu0  ;;  %v1032_v3 = vadd.f32 %v1031_v30, %v2385_v21  ;;  %v1033_v62 = vpop.f32.mrb[73].mxu1  ;;  %v2875_v38 = vsel %vm1723_vm4, %v1740_v4, %v2735_v55 }
 0x18e   :  { %v1575_v34 = vmax.f32 %v1574_v27, %v1347_v28  ;;  %v1346_v0 = vmul.f32 %v2880_v46, %v1184_v33  ;;  %v795_v57 = vadd.f32 %v794_v60, %v2389_v22  ;;  %v796_v61 = vpop.f32.mrb[73].mxu0  ;;  %v1034_v63 = vpop.f32.mrb[74].mxu1  ;;  %v1751_v43 = vsel %vm1717_vm2, %v1750_v51, %v2777_v49 }
 0x18f   :  { %v1553_v6 = vmax.f32 %v1552_v45, %v1345_v59  ;;  %v1188_v55 = vmax.f32 %v1032_v3, 0.0  ;;  %v797_v4 = vadd.f32 %v796_v61, %v2393_v23  ;;  %v798_v19 = vpop.f32.mrb[74].mxu0  ;;  %v1035_v47 = vadd.f32 %v1034_v63, %v2385_v21  ;;  %v1036_v58 = vpop.f32.mrb[75].mxu1 }
 0x190   :  { %v1576_v39 = vrot.slane %v1575_v34, 4  ;;  %v1564_v8 = vmax.f32 %v1563_v48, %v1346_v0  ;;  %v1186_v11 = vmax.f32 %v795_v57, 0.0  ;;  %v799_v44 = vadd.f32 %v798_v19, %v2389_v22  ;;  %v800_v7 = vpop.f32.mrb[75].mxu0 }
 0x191   :  { %v1554_v31 = vrot.slane %v1553_v6, 4  ;;  %v1350_v25 = vmul.f32 %v2745_v12, %v1188_v55  ;;  %v1187_v37 = vmax.f32 %v797_v4, 0.0  ;;  %v1191_v52 = vmax.f32 %v1035_v47, 0.0 }
 0x192   :  { %v1577_v51 = vmax.f32 %v1575_v34, %v1576_v39  ;;  %v1565_v49 = vrot.slane %v1564_v8, 4  ;;  %v1348_v27 = vmul.f32 %v2751_v54, %v1186_v11  ;;  %v1189_v40 = vmax.f32 %v799_v44, 0.0 }
 0x193   :  { %v1555_v20 = vmax.f32 %v1553_v6, %v1554_v31  ;;  %v1349_v45 = vmul.f32 %v2757_v14, %v1187_v37  ;;  %v1353_v28 = vmul.f32 %v2763_v36, %v1191_v52  ;;  %v801_v33 = vadd.f32 %v800_v7, %v2393_v23 }
 0x194   :  { %v1578_v30 = vrot.slane %v1577_v51, 2  ;;  %v1566_v48 = vmax.f32 %v1564_v8, %v1565_v49  ;;  %v1351_v59 = vmul.f32 %v2770_v18, %v1189_v40  ;;  %v1039_v60 = vpop.f32.mrb[76].mxu1  ;;  %v2900_v3 = vsel %vm1720_vm3, %v1752_v10, %v1751_v43 }
 0x195   :  { %v1556_v62 = vrot.slane %v1555_v20, 2  ;;  %v1604_v34 = vmax.f32 %v1350_v25, %v1353_v28  ;;  %v1190_v0 = vmax.f32 %v801_v33, 0.0  ;;  %v1040_v57 = vadd.f32 %v1039_v60, %v2385_v21  ;;  %v804_v61 = vpop.f32.mrb[76].mxu0  ;;  %v1041_v63 = vpop.f32.mrb[77].mxu1 }
 0x196   :  { %v1579_v6 = vmax.f32 %v1577_v51, %v1578_v30  ;;  %v1567_v55 = vrot.slane %v1566_v48, 2  ;;  %v1582_v4 = vmax.f32 %v1348_v27, %v1351_v59  ;;  %v805_v19 = vadd.f32 %v804_v61, %v2389_v22  ;;  %v806_v47 = vpop.f32.mrb[77].mxu0  ;;  %v1042_v58 = vpop.f32.mrb[78].mxu1 }
 0x197   :  { %v1557_v39 = vmax.f32 %v1555_v20, %v1556_v62  ;;  %v1352_v56 = vmul.f32 %v2784_v35, %v1190_v0  ;;  %v1194_v8 = vmax.f32 %v1040_v57, 0.0  ;;  %v807_v10 = vadd.f32 %v806_v47, %v2393_v23  ;;  %v808_v43 = vpop.f32.mrb[78].mxu0  ;;  %v1044_v11 = vpop.f32.mrb[79].mxu1 }
 0x198   :  { %v1580_v44 = vrot.slane %v1579_v6, 1  ;;  %v1568_v7 = vmax.f32 %v1566_v48, %v1567_v55  ;;  %v1192_v31 = vmax.f32 %v805_v19, 0.0  ;;  %v1043_v25 = vadd.f32 %v1042_v58, %v2385_v21  ;;  %v810_v37 = vpop.f32.mrb[79].mxu0 }
 0x199   :  { %v1558_v52 = vrot.slane %v1557_v39, 1  ;;  %v1593_v51 = vmax.f32 %v1349_v45, %v1352_v56  ;;  %v1356_v49 = vmul.f32 %v2792_v9, %v1194_v8  ;;  %v1193_v27 = vmax.f32 %v807_v10, 0.0 }
 0x19a   :  { %v1581_v40 = vmax.f32 %v1579_v6, %v1580_v44  ;;  %v1569_v20 = vrot.slane %v1568_v7, 1  ;;  %v1354_v28 = vmul.f32 %v2798_v17, %v1192_v31  ;;  %v1197_v33 = vmax.f32 %v1043_v25, 0.0 }
 0x19b   :  { %v1559_v30 = vmax.f32 %v1557_v39, %v1558_v52  ;;  %v1605_v59 = vmax.f32 %v1604_v34, %v1356_v49  ;;  %v1355_v60 = vmul.f32 %v2804_v32, %v1193_v27  ;;  %v809_v48 = vadd.f32 %v808_v43, %v2389_v22 }
 0x19c   :  { %v1570_v62 = vmax.f32 %v1568_v7, %v1569_v20  ;;  %v1583_v0 = vmax.f32 %v1582_v4, %v1354_v28  ;;  %v1359_v57 = vmul.f32 %v2811_v24, %v1197_v33  ;;  %v811_v45 = vadd.f32 %v810_v37, %v2393_v23  ;;  %v1047_v61 = vpop.f32.mrb[80].mxu1 }
 0x19d   :  { %v1594_v63 = vmax.f32 %v1593_v51, %v1355_v60  ;;  %v1195_v6 = vmax.f32 %v809_v48, 0.0  ;;  %v1048_v55 = vadd.f32 %v1047_v61, %v2385_v21  ;;  %v814_v19 = vpop.f32.mrb[80].mxu0  ;;  %v1049_v47 = vpop.f32.mrb[81].mxu1  ;;  %v1680_v58 = vmul.f32 %v2548_v1, %v1559_v30 }
 0x19e   :  { %v1606_v34 = vmax.f32 %v1605_v59, %v1359_v57  ;;  %v1196_v39 = vmax.f32 %v811_v45, 0.0  ;;  %v815_v56 = vadd.f32 %v814_v19, %v2389_v22  ;;  %v816_v8 = vpop.f32.mrb[81].mxu0  ;;  %v1050_v10 = vpop.f32.mrb[82].mxu1  ;;  %v1681_v4 = vmul.f32 %v2552_v2, %v1570_v62 }
 0x19f   :  { %v1357_v43 = vmul.f32 %v2822_v41, %v1195_v6  ;;  %v1200_v11 = vmax.f32 %v1048_v55, 0.0  ;;  %v817_v44 = vadd.f32 %v816_v8, %v2393_v23  ;;  %v1051_v7 = vadd.f32 %v1050_v10, %v2385_v21  ;;  %v818_v31 = vpop.f32.mrb[82].mxu0  ;;  %v1052_v25 = vpop.f32.mrb[83].mxu1 }
 0x1a0   :  { %v1358_v37 = vmul.f32 %v2829_v26, %v1196_v39  ;;  %v1198_v52 = vmax.f32 %v815_v56, 0.0  ;;  %v819_v51 = vadd.f32 %v818_v31, %v2389_v22  ;;  %v820_v49 = vpop.f32.mrb[83].mxu0  ;;  %v2923_v27 = vmul.f32 %v2542_v53, %v1581_v40 }
 0x1a1   :  { %v1584_v20 = vmax.f32 %v1583_v0, %v1357_v43  ;;  %v1362_v28 = vmul.f32 %v2836_v29, %v1200_v11  ;;  %v1199_v33 = vmax.f32 %v817_v44, 0.0  ;;  %v1203_v30 = vmax.f32 %v1051_v7, 0.0 }
 0x1a2   :  { %v1595_v59 = vmax.f32 %v1594_v63, %v1358_v37  ;;  %v1360_v60 = vmul.f32 %v2843_v15, %v1198_v52  ;;  %v1201_v48 = vmax.f32 %v819_v51, 0.0  ;;  %v821_v62 = vadd.f32 %v820_v49, %v2393_v23 }
 0x1a3   :  { %v1607_v57 = vmax.f32 %v1606_v34, %v1362_v28  ;;  %v1361_v45 = vmul.f32 %v2850_v5, %v1199_v33  ;;  %v1365_v61 = vmul.f32 %v2859_v50, %v1203_v30  ;;  %v1725_v6 = vrot.slane %v1680_v58, 3 }
 0x1a4   :  { %v1585_v55 = vmax.f32 %v1584_v20, %v1360_v60  ;;  %v1363_v40 = vmul.f32 %v2869_v13, %v1201_v48  ;;  %v1202_v0 = vmax.f32 %v821_v62, 0.0  ;;  %v1055_v19 = vpop.f32.mrb[84].mxu1  ;;  %v1742_v47 = vrot.slane %v1681_v4, 3 }
 0x1a5   :  { %v1596_v39 = vmax.f32 %v1595_v59, %v1361_v45  ;;  %v1608_v56 = vmax.f32 %v1607_v57, %v1365_v61  ;;  %v824_v63 = vpop.f32.mrb[84].mxu0  ;;  %v1056_v8 = vadd.f32 %v1055_v19, %v2385_v21  ;;  %v1057_v10 = vpop.f32.mrb[85].mxu1  ;;  %v2934_v34 = vsel %vm1726_vm5, %v1725_v6, %v2864_v42 }
 0x1a6   :  { %v1586_v43 = vmax.f32 %v1585_v55, %v1363_v40  ;;  %v1364_v11 = vmul.f32 %v2880_v46, %v1202_v0  ;;  %v825_v58 = vadd.f32 %v824_v63, %v2389_v22  ;;  %v826_v44 = vpop.f32.mrb[85].mxu0  ;;  %v1058_v7 = vpop.f32.mrb[86].mxu1  ;;  %v2940_v4 = vsel %vm1726_vm5, %v1742_v47, %v2875_v38 }
 0x1a7   :  { %v1609_v31 = vrot.slane %v1608_v56, 4  ;;  %v1206_v25 = vmax.f32 %v1056_v8, 0.0  ;;  %v827_v37 = vadd.f32 %v826_v44, %v2393_v23  ;;  %v828_v52 = vpop.f32.mrb[86].mxu0  ;;  %v1059_v51 = vadd.f32 %v1058_v7, %v2385_v21  ;;  %v1060_v42 = vpop.f32.mrb[87].mxu1 }
 0x1a8   :  { %v1587_v49 = vrot.slane %v1586_v43, 4  ;;  %v1597_v20 = vmax.f32 %v1596_v39, %v1364_v11  ;;  %v1204_v28 = vmax.f32 %v825_v58, 0.0  ;;  %v829_v33 = vadd.f32 %v828_v52, %v2389_v22  ;;  %v830_v30 = vpop.f32.mrb[87].mxu0 }
 0x1a9   :  { %v1610_v59 = vmax.f32 %v1608_v56, %v1609_v31  ;;  %v1368_v60 = vmul.f32 %v2745_v12, %v1206_v25  ;;  %v1205_v48 = vmax.f32 %v827_v37, 0.0  ;;  %v1209_v38 = vmax.f32 %v1059_v51, 0.0 }
 0x1aa   :  { %v1588_v62 = vmax.f32 %v1586_v43, %v1587_v49  ;;  %v1598_v57 = vrot.slane %v1597_v20, 4  ;;  %v1366_v45 = vmul.f32 %v2751_v54, %v1204_v28  ;;  %v1207_v61 = vmax.f32 %v829_v33, 0.0 }
 0x1ab   :  { %v1611_v6 = vrot.slane %v1610_v59, 2  ;;  %v1367_v55 = vmul.f32 %v2757_v14, %v1205_v48  ;;  %v1371_v40 = vmul.f32 %v2763_v36, %v1209_v38  ;;  %v831_v0 = vadd.f32 %v830_v30, %v2393_v23 }
 0x1ac   :  { %v1589_v19 = vrot.slane %v1588_v62, 2  ;;  %v1599_v47 = vmax.f32 %v1597_v20, %v1598_v57  ;;  %v1369_v39 = vmul.f32 %v2770_v18, %v1207_v61  ;;  %v1063_v56 = vpop.f32.mrb[88].mxu1  ;;  %v1754_v12 = vrot.slane %v2854_v16, 4 }
 0x1ad   :  { %v1612_v63 = vmax.f32 %v1610_v59, %v1611_v6  ;;  %v1637_v8 = vmax.f32 %v1368_v60, %v1371_v40  ;;  %v1208_v10 = vmax.f32 %v831_v0, 0.0  ;;  %v1064_v54 = vadd.f32 %v1063_v56, %v2385_v21  ;;  %v834_v43 = vpop.f32.mrb[88].mxu0  ;;  %v1065_v11 = vpop.f32.mrb[89].mxu1 }
 0x1ae   :  { %v1590_v58 = vmax.f32 %v1588_v62, %v1589_v19  ;;  %v1600_v14 = vrot.slane %v1599_v47, 2  ;;  %v1615_v44 = vmax.f32 %v1366_v45, %v1369_v39  ;;  %v835_v36 = vadd.f32 %v834_v43, %v2389_v22  ;;  %v836_v7 = vpop.f32.mrb[89].mxu0  ;;  %v1066_v31 = vpop.f32.mrb[90].mxu1 }
 0x1af   :  { %v1613_v25 = vrot.slane %v1612_v63, 1  ;;  %v1370_v18 = vmul.f32 %v2784_v35, %v1208_v10  ;;  %v1212_v37 = vmax.f32 %v1064_v54, 0.0  ;;  %v837_v52 = vadd.f32 %v836_v7, %v2393_v23  ;;  %v838_v51 = vpop.f32.mrb[90].mxu0  ;;  %v1068_v42 = vpop.f32.mrb[91].mxu1 }
 0x1b0   :  { %v1591_v49 = vrot.slane %v1590_v58, 1  ;;  %v1601_v20 = vmax.f32 %v1599_v47, %v1600_v14  ;;  %v1210_v28 = vmax.f32 %v835_v36, 0.0  ;;  %v1067_v33 = vadd.f32 %v1066_v31, %v2385_v21  ;;  %v840_v30 = vpop.f32.mrb[91].mxu0 }
 0x1b1   :  { %v1626_v59 = vmax.f32 %v1367_v55, %v1370_v18  ;;  %v1374_v60 = vmul.f32 %v2792_v9, %v1212_v37  ;;  %v1211_v48 = vmax.f32 %v837_v52, 0.0  ;;  %v839_v38 = vadd.f32 %v838_v51, %v2389_v22 }
 0x1b2   :  { %v1592_v62 = vmax.f32 %v1590_v58, %v1591_v49  ;;  %v1602_v35 = vrot.slane %v1601_v20, 1  ;;  %v1372_v57 = vmul.f32 %v2798_v17, %v1210_v28  ;;  %v1215_v45 = vmax.f32 %v1067_v33, 0.0 }
 0x1b3   :  { %v1638_v61 = vmax.f32 %v1637_v8, %v1374_v60  ;;  %v1373_v6 = vmul.f32 %v2804_v32, %v1211_v48  ;;  %v1213_v40 = vmax.f32 %v839_v38, 0.0  ;;  %v841_v0 = vadd.f32 %v840_v30, %v2393_v23 }
 0x1b4   :  { %v1603_v19 = vmax.f32 %v1601_v20, %v1602_v35  ;;  %v1616_v47 = vmax.f32 %v1615_v44, %v1372_v57  ;;  %v1377_v55 = vmul.f32 %v2811_v24, %v1215_v45  ;;  %v1071_v9 = vpop.f32.mrb[92].mxu1  ;;  %v1614_v39 = vmax.f32 %v1612_v63, %v1613_v25 }
 0x1b5   :  { %v1627_v56 = vmax.f32 %v1626_v59, %v1373_v6  ;;  %v1375_v10 = vmul.f32 %v2822_v41, %v1213_v40  ;;  %v1214_v54 = vmax.f32 %v841_v0, 0.0  ;;  %v1072_v43 = vadd.f32 %v1071_v9, %v2385_v21  ;;  %v844_v17 = vpop.f32.mrb[92].mxu0  ;;  %v1073_v11 = vpop.f32.mrb[93].mxu1 }
 0x1b6   :  { %v1639_v8 = vmax.f32 %v1638_v61, %v1377_v55  ;;  %v845_v32 = vadd.f32 %v844_v17, %v2389_v22  ;;  %v846_v58 = vpop.f32.mrb[93].mxu0  ;;  %v1074_v14 = vpop.f32.mrb[94].mxu1  ;;  %v1683_v36 = vmul.f32 %v2548_v1, %v1592_v62  ;;  %v1684_v44 = vmul.f32 %v2552_v2, %v1603_v19 }
 0x1b7   :  { %v1617_v24 = vmax.f32 %v1616_v47, %v1375_v10  ;;  %v1376_v63 = vmul.f32 %v2829_v26, %v1214_v54  ;;  %v1218_v7 = vmax.f32 %v1072_v43, 0.0  ;;  %v847_v41 = vadd.f32 %v846_v58, %v2393_v23  ;;  %v848_v31 = vpop.f32.mrb[94].mxu0  ;;  %v1076_v25 = vpop.f32.mrb[95].mxu1 }
 0x1b8   :  { %v1216_v18 = vmax.f32 %v845_v32, 0.0  ;;  %v1075_v37 = vadd.f32 %v1074_v14, %v2385_v21  ;;  %v849_v52 = vadd.f32 %v848_v31, %v2389_v22  ;;  %v850_v51 = vpop.f32.mrb[95].mxu0  ;;  %v1685_v42 = vmul.f32 %v2542_v53, %v1614_v39 }
 0x1b9   :  { %v1628_v49 = vmax.f32 %v1627_v56, %v1376_v63  ;;  %v1380_v20 = vmul.f32 %v2836_v29, %v1218_v7  ;;  %v1217_v28 = vmax.f32 %v847_v41, 0.0  ;;  %v851_v33 = vadd.f32 %v850_v51, %v2393_v23 }
 0x1ba   :  { %v1378_v26 = vmul.f32 %v2843_v15, %v1216_v18  ;;  %v1221_v30 = vmax.f32 %v1075_v37, 0.0  ;;  %v1219_v59 = vmax.f32 %v849_v52, 0.0  ;;  %v1728_v60 = vrot.slane %v1683_v36, 2 }
 0x1bb   :  { %v1640_v48 = vmax.f32 %v1639_v8, %v1380_v20  ;;  %v1379_v38 = vmul.f32 %v2850_v5, %v1217_v28  ;;  %v1220_v21 = vmax.f32 %v851_v33, 0.0  ;;  %v1744_v62 = vrot.slane %v1684_v44, 2 }
 0x1bc   :  { %v1618_v22 = vmax.f32 %v1617_v24, %v1378_v26  ;;  %v1383_v35 = vmul.f32 %v2859_v50, %v1221_v30  ;;  %v1381_v57 = vmul.f32 %v2869_v13, %v1219_v59  ;;  %v1730_v29 = vsel %vm1729_vm6, %v1728_v60, %v2934_v34 }
 0x1bd   :  { %v1629_v45 = vmax.f32 %v1628_v49, %v1379_v38  ;;  %v1382_v23 = vmul.f32 %v2880_v46, %v1220_v21  ;;  %v1745_v15 = vsel %vm1729_vm6, %v1744_v62, %v2940_v4  ;;  %v1755_v5 = vsel %vm1723_vm4, %v1754_v12, %v2900_v3 }
 0x1be   :  { %v1641_v61 = vmax.f32 %v1640_v48, %v1383_v35  ;;  %v1619_v6 = vmax.f32 %v1618_v22, %v1381_v57  ;;  %v1756_v50 = vrot.slane %v2923_v27, 3  ;;  %v1758_v40 = vrot.slane %v1685_v42, 2 }
 0x1bf   :  { %v1630_v13 = vmax.f32 %v1629_v45, %v1382_v23  ;;  %v11_v34 = vstv %s3005_s5 }
 0x1c0   :  { %v1642_v0 = vrot.slane %v1641_v61, 4  ;;  %v1620_v46 = vrot.slane %v1619_v6, 4  ;;  %v1757_v19 = vsel %vm1726_vm5, %v1756_v50, %v1755_v5  ;;  %12 = vst [vmem:[#allocation2] sm:$0x1] %v11_v34 }
 0x1c1   :  { %v1631_v4 = vrot.slane %v1630_v13, 4  ;;  %v1759_v16 = vsel %vm1729_vm6, %v1758_v40, %v1757_v19 }
 0x1c2   :  { %v1643_v47 = vmax.f32 %v1641_v61, %v1642_v0  ;;  %v1621_v3 = vmax.f32 %v1619_v6, %v1620_v46 }
 0x1c3   :  { %v1632_v12 = vmax.f32 %v1630_v13, %v1631_v4 }
 0x1c4   :  { %v1644_v55 = vrot.slane %v1643_v47, 2  ;;  %v1622_v9 = vrot.slane %v1621_v3, 2 }
 0x1c5   :  { %v1633_v27 = vrot.slane %v1632_v12, 2 }
 0x1c6   :  { %v1645_v39 = vmax.f32 %v1643_v47, %v1644_v55  ;;  %v1623_v56 = vmax.f32 %v1621_v3, %v1622_v9 }
 0x1c7   :  { %v1634_v10 = vmax.f32 %v1632_v12, %v1633_v27  ;;  %v1913_v37 = vld [vmem:[#allocation2] ss:$0 sm:$0xff] }
 0x1c8   :  { %v1624_v54 = vrot.slane %v1623_v56, 1  ;;  %v1646_v43 = vrot.slane %v1645_v39, 1 }
 0x1c9   :  { %v1635_v17 = vrot.slane %v1634_v10, 1 }
 0x1ca   :  { %v1625_v11 = vmax.f32 %v1623_v56, %v1624_v54  ;;  %v1647_v8 = vmax.f32 %v1645_v39, %v1646_v43 }
 0x1cb   :  { %v1636_v32 = vmax.f32 %v1634_v10, %v1635_v17 }
 0x1cc   :  { %v1686_v58 = vmul.f32 %v2548_v1, %v1625_v11  ;;  %v1688_v14 = vmul.f32 %v2542_v53, %v1647_v8 }
 0x1cd   :  { %v1687_v36 = vmul.f32 %v2552_v2, %v1636_v32 }
 0x1ce   :  { %v1731_v44 = vrot.slane %v1686_v58, 1  ;;  %v1760_v24 = vrot.slane %v1688_v14, 1 }
 0x1cf   :  { %v1746_v63 = vrot.slane %v1687_v36, 1 }
 0x1d0   :  { %v1733_v7 = vsel %vm1732_vm7, %v1731_v44, %v1730_v29  ;;  %v1761_v41 = vsel %vm1732_vm7, %v1760_v24, %v1759_v16 }
 0x1d1   :  { %v1747_v31 = vsel %vm1732_vm7, %v1746_v63, %v1745_v15 }
 0x1d2   :  { %v1765_v25 = vadd.f32 %v1747_v31, %v1733_v7 }
 0x1d4   :  { %v1766_v18 = vadd.f32 %v1765_v25, %v1761_v41 }
 0x1d6   :  { %1767 = vadd.xlane.f32.xlu0 %v1766_v18 }
 0x263   :  { %v1768_v52 = vpop.xlane.xlu0 %1767 }
 0x264   :  { %v1776_v51 = vadd.f32 %v1913_v37, %v1768_v52 }
 0x266   :  { %1779 = vperm.xlu0 %1915, %v1776_v51  }
 0x2e5   :  { %v1780_v42 = vpop.permute.xlu0 %1779 }
 0x2e6   :  { %1782 = vst [vmem:[%s3006_s6] sm:$0xff] %v1780_v42 }

</bundles_post_ra>
